<compile_context>
chip_gen: v6e
topology: v6e:2x2x1
jax: 0.10.0
libtpu: 0.0.40
codegen_flags: <defaults>
</compile_context>

<pallas_src>
import functools

import jax
import jax.numpy as jnp
from jax.experimental import pallas as pl
from jax.experimental.pallas import tpu as pltpu

_BN_EPS = 1e-5


# ------------------------------- fused kernel -------------------------------

def _fused_block_kernel(xm_ref, xt_ref, xb_ref,
                        w1_ref, b1_ref, w2_ref, b2_ref, w3_ref, b3_ref,
                        o_ref, yp_ref, *, stride, skip):
    # xm_ref: (1, th*stride, W, Cin)   main input rows for this tile
    # xt_ref: (1, 1, W, Cin)           row just above the tile (clamped)
    # xb_ref: (1, 1, W, Cin)           row just below the tile (clamped)
    # w1: (Cin, Cmid)  b1: (1, Cmid)   expand 1x1 (BN folded)
    # w2: (3, 3, Cmid) b2: (1, Cmid)   depthwise 3x3 (BN folded)
    # w3: (Cmid, Cout) b3: (1, Cout)   squeeze 1x1 (BN folded)
    # o_ref: (1, th, Wo, Cout)
    # yp_ref: VMEM scratch (th*stride + 2, W + 2, Cmid) zero-padded expanded act.
    _, th_x, W, Cin = xm_ref.shape
    _, th, Wo, Cout = o_ref.shape
    Cmid = w1_ref.shape[1]

    w1 = w1_ref[...].astype(jnp.bfloat16)
    b1 = b1_ref[...]  # (1, Cmid) f32

    def expand(x2d):  # (M, Cin) -> ReLU6(x @ w1 + b1), f32 accumulation
        y = jnp.dot(x2d.astype(jnp.bfloat16), w1,
                    preferred_element_type=jnp.float32)
        return jnp.clip(y + b1, 0.0, 6.0)

    i = pl.program_id(1)
    top_ok = (i > 0).astype(jnp.float32)
    bot_ok = (i < pl.num_programs(1) - 1).astype(jnp.float32)

    xm = xm_ref[0]                               # (th_x, W, Cin)  f32
    xm2d = xm.reshape(th_x * W, Cin)
    y_main = expand(xm2d).reshape(th_x, W, Cmid)
    # Halo rows: zero padding is applied to the *expanded* activation, so the
    # out-of-image halo rows must be exactly 0 (mask after the activation).
    y_top = expand(xt_ref[...].reshape(W, Cin)) * top_ok    # (W, Cmid)
    y_bot = expand(xb_ref[...].reshape(W, Cin)) * bot_ok    # (W, Cmid)

    # Assemble the W-zero-padded expanded tile in VMEM scratch (no HBM pad).
    zcol = jnp.zeros((th_x + 2, 1, Cmid), jnp.float32)
    yp_ref[:, 0:1, :] = zcol
    yp_ref[:, W + 1:W + 2, :] = zcol
    yp_ref[0:1, 1:W + 1, :] = y_top[None]
    yp_ref[th_x + 1:th_x + 2, 1:W + 1, :] = y_bot[None]
    yp_ref[1:th_x + 1, 1:W + 1, :] = y_main

    ypv = yp_ref[...]                            # (th_x+2, W+2, Cmid)
    w2v = w2_ref[...]                            # (3, 3, Cmid) f32

    if stride == 2:
        # Phase subsampling: 4 strided slices once, then every tap below is a
        # contiguous slice of one phase (cheaper than 9 strided gathers).
        phases = [[jax.lax.slice(ypv, (py, px, 0),
                                 (th_x + 2, W + 2, Cmid), (2, 2, 1))
                   for px in range(2)] for py in range(2)]

    acc = jnp.zeros((th, Wo, Cmid), jnp.float32)
    for dy in range(3):
        for dx in range(3):
            if stride == 1:
                tap = ypv[dy:dy + th, dx:dx + Wo, :]
            else:
                p = phases[dy % 2][dx % 2]
                tap = p[dy // 2:dy // 2 + th, dx // 2:dx // 2 + Wo, :]
            acc = acc + tap * w2v[dy:dy + 1, dx:dx + 1, :]
    z = jnp.clip(acc + b2_ref[...].reshape(1, 1, Cmid), 0.0, 6.0)

    # 1x1 squeeze (+ ReLU6, matching the reference module) [+ residual add].
    z2d = z.reshape(th * Wo, Cmid)
    w3 = w3_ref[...].astype(jnp.bfloat16)
    o = jnp.dot(z2d.astype(jnp.bfloat16), w3,
                preferred_element_type=jnp.float32) + b3_ref[...]
    o = jnp.clip(o, 0.0, 6.0)
    if skip:  # static; s==1 -> th_x == th, W == Wo, Cin == Cout
        o = o + xm2d
    o_ref[0] = o.reshape(th, Wo, Cout).astype(o_ref.dtype)


# ------------------------------ pallas wrapper -------------------------------

def _choose_th(N, Ho, Wo):
    """Rows of output per grid step: ~128 flattened rows per step (one full MXU
    M-pass) while keeping >= ~4 independent grid steps for pipelining and the
    2 TensorCores on v7x."""
    target = max(1, 128 // max(1, Wo))
    divs = [d for d in range(1, Ho + 1) if Ho % d == 0]
    th = max([d for d in divs if d <= target], default=1)
    while th > 1 and N * (Ho // th) < 4:
        smaller = [d for d in divs if d < th]
        if not smaller:
            break
        th = max(smaller)
    return th


def _fused_block_pallas(x_nhwc, fw, stride, skip):
    N, H, W, Cin = x_nhwc.shape
    Cmid = fw["w1"].shape[1]
    Cout = fw["w3"].shape[1]
    Ho, Wo = H // stride, W // stride

    th = _choose_th(N, Ho, Wo)
    num_t = Ho // th
    th_x = th * stride

    kernel = functools.partial(_fused_block_kernel, stride=stride, skip=skip)

    return pl.pallas_call(
        kernel,
        out_shape=jax.ShapeDtypeStruct((N, Ho, Wo, Cout), jnp.float32),
        grid=(N, num_t),
        in_specs=[
            # main rows of this tile
            pl.BlockSpec((1, th_x, W, Cin), lambda n, i: (n, i, 0, 0)),
            # 1-row halo above / below (block size 1 -> block index == row index;
            # clamped at the border, masked to zero inside the kernel)
            pl.BlockSpec((1, 1, W, Cin),
                         lambda n, i: (n, jnp.maximum(i * th_x - 1, 0), 0, 0)),
            pl.BlockSpec((1, 1, W, Cin),
                         lambda n, i: (n, jnp.minimum((i + 1) * th_x, H - 1), 0, 0)),
            # weights / biases: constant block index -> DMA'd once, stays resident
            pl.BlockSpec((Cin, Cmid), lambda n, i: (0, 0)),
            pl.BlockSpec((1, Cmid), lambda n, i: (0, 0)),
            pl.BlockSpec((3, 3, Cmid), lambda n, i: (0, 0, 0)),
            pl.BlockSpec((1, Cmid), lambda n, i: (0, 0)),
            pl.BlockSpec((Cmid, Cout), lambda n, i: (0, 0)),
            pl.BlockSpec((1, Cout), lambda n, i: (0, 0)),
        ],
        out_specs=pl.BlockSpec((1, th, Wo, Cout), lambda n, i: (n, i, 0, 0)),
        scratch_shapes=[pltpu.VMEM((th_x + 2, W + 2, Cmid), jnp.float32)],
        compiler_params=pltpu.CompilerParams(
            dimension_semantics=("parallel", "parallel")),
    )(x_nhwc, x_nhwc, x_nhwc,
      fw["w1"], fw["b1"].reshape(1, Cmid),
      fw["w2"], fw["b2"].reshape(1, Cmid),
      fw["w3"], fw["b3"].reshape(1, Cout))


# ------------------------------ module logic --------------------------------

def _fold_bn_pointwise(w, cb, gamma, beta, mean, var):
    scale = gamma / jnp.sqrt(var + _BN_EPS)
    return w * scale[None, :], (cb - mean) * scale + beta


def _fold_bn_depthwise(w, cb, gamma, beta, mean, var):
    scale = gamma / jnp.sqrt(var + _BN_EPS)
    return w * scale[None, None, :], (cb - mean) * scale + beta


def _fold_params(p):
    w1, b1 = _fold_bn_pointwise(p["w1"], p["cb1"], p["g1"], p["be1"], p["m1"], p["v1"])
    w2, b2 = _fold_bn_depthwise(p["w2"], p["cb2"], p["g2"], p["be2"], p["m2"], p["v2"])
    w3, b3 = _fold_bn_pointwise(p["w3"], p["cb3"], p["g3"], p["be3"], p["m3"], p["v3"])
    return {"w1": w1, "b1": b1, "w2": w2, "b2": b2, "w3": w3, "b3": b3}


def init_params(key, input_channels, output_channels, t):
    inter = t * input_channels

    def kaiming_uniform(k, shape, fan_in):
        bound = jnp.sqrt(6.0 / fan_in)
        return jax.random.uniform(k, shape, jnp.float32, -bound, bound)

    ks = jax.random.split(key, 15)
    p = {}
    # expand 1x1: torch weight (inter, Cin, 1, 1) -> stored (Cin, inter)
    p["w1"] = kaiming_uniform(ks[0], (input_channels, inter), input_channels)
    p["cb1"] = jax.random.uniform(ks[1], (inter,), jnp.float32, -0.1, 0.1)
    p["g1"] = 1.0 + 0.1 * jax.random.normal(ks[2], (inter,), jnp.float32)
    p["be1"] = 0.1 * jax.random.normal(ks[3], (inter,), jnp.float32)
    p["m1"] = 0.1 * jax.random.normal(ks[4], (inter,), jnp.float32)
    p["v1"] = 1.0 + 0.1 * jax.random.uniform(ks[5], (inter,), jnp.float32)
    # depthwise 3x3: torch weight (inter, 1, 3, 3) -> stored (3, 3, inter)
    p["w2"] = kaiming_uniform(ks[6], (3, 3, inter), 9)
    p["cb2"] = jax.random.uniform(ks[7], (inter,), jnp.float32, -0.1, 0.1)
    p["g2"] = 1.0 + 0.1 * jax.random.normal(ks[8], (inter,), jnp.float32)
    p["be2"] = 0.1 * jax.random.normal(ks[9], (inter,), jnp.float32)
    p["m2"] = 0.1 * jax.random.normal(ks[10], (inter,), jnp.float32)
    p["v2"] = 1.0 + 0.1 * jax.random.uniform(ks[11], (inter,), jnp.float32)
    # squeeze 1x1: torch weight (Cout, inter, 1, 1) -> stored (inter, Cout)
    p["w3"] = kaiming_uniform(ks[12], (inter, output_channels), inter)
    p["cb3"] = jax.random.uniform(ks[13], (output_channels,), jnp.float32, -0.1, 0.1)
    p["g3"] = 1.0 + 0.1 * jax.random.normal(ks[14], (output_channels,), jnp.float32)
    p["be3"] = jnp.zeros((output_channels,), jnp.float32)
    p["m3"] = jnp.zeros((output_channels,), jnp.float32)
    p["v3"] = jnp.ones((output_channels,), jnp.float32)
    return p


def bottleneck_residual_block(x_nchw, params, stride):
    """x_nchw: (N, Cin, H, W) float32. Returns (N, Cout, Ho, Wo)."""
    N, Cin, H, W = x_nchw.shape
    Cout = params["w3"].shape[1]
    assert stride in (1, 2)
    if stride == 2:
        assert H % 2 == 0 and W % 2 == 0, "stride-2 path assumes even H, W"
    skip = (stride == 1) and (Cin == Cout)

    fw = _fold_params(params)
    # TODO(synk): when chaining NHWC blocks, keep activations NHWC end-to-end and
    # move these NCHW<->NHWC transposes to the network boundary (extra HBM trips).
    x = jnp.transpose(x_nchw, (0, 2, 3, 1))  # NHWC
    out = _fused_block_pallas(x, fw, stride, skip)
    return jnp.transpose(out, (0, 3, 1, 2))  # back to NCHW


# ------------------------------ references ----------------------------------

def matched_reference(x_nchw, params, stride):
    """Pure-JAX reference with the SAME numerical contract as the kernel:
    BN folded, bf16 MXU inputs with f32 accumulation, f32 depthwise."""
    fw = _fold_params(params)
    x = jnp.transpose(x_nchw, (0, 2, 3, 1))
    N, H, W, Cin = x.shape
    Cmid = fw["w1"].shape[1]
    Cout = fw["w3"].shape[1]
    skip = (stride == 1) and (Cin == Cout)
    hp = jax.lax.Precision.HIGHEST

    y = jnp.einsum("nhwc,cd->nhwd", x.astype(jnp.bfloat16),
                   fw["w1"].astype(jnp.bfloat16),
                   preferred_element_type=jnp.float32, precision=hp) + fw["b1"]
    y = jnp.clip(y, 0.0, 6.0)

    z = jax.lax.conv_general_dilated(
        y, fw["w2"].reshape(3, 3, 1, Cmid), window_strides=(stride, stride),
        padding=((1, 1), (1, 1)), dimension_numbers=("NHWC", "HWIO", "NHWC"),
        feature_group_count=Cmid, precision=hp) + fw["b2"]
    z = jnp.clip(z, 0.0, 6.0)

    o = jnp.einsum("nhwc,cd->nhwd", z.astype(jnp.bfloat16),
                   fw["w3"].astype(jnp.bfloat16),
                   preferred_element_type=jnp.float32, precision=hp) + fw["b3"]
    o = jnp.clip(o, 0.0, 6.0)
    if skip:
        o = o + x
    return jnp.transpose(o, (0, 3, 1, 2))


def f32_reference(x_nchw, p, stride):
    """Exact f32 semantics of the PyTorch module (unfolded BN, HIGHEST)."""
    def bn(y, g, be, m, v):
        return (y - m) / jnp.sqrt(v + _BN_EPS) * g + be

    relu6 = lambda y: jnp.clip(y, 0.0, 6.0)
    hp = jax.lax.Precision.HIGHEST
    x = jnp.transpose(x_nchw, (0, 2, 3, 1))
    N, H, W, Cin = x.shape
    Cout = p["w3"].shape[1]
    skip = (stride == 1) and (Cin == Cout)

    y = jnp.einsum("nhwc,cd->nhwd", x, p["w1"], precision=hp) + p["cb1"]
    y = relu6(bn(y, p["g1"], p["be1"], p["m1"], p["v1"]))

    C = y.shape[-1]
    z = jax.lax.conv_general_dilated(
        y, p["w2"].reshape(3, 3, 1, C), window_strides=(stride, stride),
        padding=((1, 1), (1, 1)), dimension_numbers=("NHWC", "HWIO", "NHWC"),
        feature_group_count=C, precision=hp) + p["cb2"]
    z = relu6(bn(z, p["g2"], p["be2"], p["m2"], p["v2"]))

    o = jnp.einsum("nhwc,cd->nhwd", z, p["w3"], precision=hp) + p["cb3"]
    o = relu6(bn(o, p["g3"], p["be3"], p["m3"], p["v3"]))
    if skip:
        o = o + x
    return jnp.transpose(o, (0, 3, 1, 2))


# ---------------------------------- main -------------------------------------

if __name__ == "__main__":
    key = jax.random.PRNGKey(0)
    k_x, k_p1, k_p2 = jax.random.split(key, 3)

    N, Cin, H, W, t = 2, 8, 16, 16, 4
    x = jax.random.normal(k_x, (N, Cin, H, W), jnp.float32)

    # Config A: stride 1, Cin == Cout -> residual skip path active.
    params1 = init_params(k_p1, Cin, 8, t)
    out1 = jax.block_until_ready(bottleneck_residual_block(x, params1, 1))
    ref1 = matched_reference(x, params1, 1)
    assert out1.shape == (N, 8, H, W)
    assert jnp.allclose(out1, ref1, rtol=1e-3, atol=1e-3), (
        float(jnp.max(jnp.abs(out1 - ref1))))
    # Loose sanity vs. the exact f32 module (deviation = bf16-input matmuls only).
    assert float(jnp.mean(jnp.abs(out1 - f32_reference(x, params1, 1)))) < 5e-2

    # Config B: stride 2 downsampling, Cin != Cout -> no skip.
    params2 = init_params(k_p2, Cin, 16, t)
    out2 = jax.block_until_ready(bottleneck_residual_block(x, params2, 2))
    ref2 = matched_reference(x, params2, 2)
    assert out2.shape == (N, 16, H // 2, W // 2)
    assert jnp.allclose(out2, ref2, rtol=1e-3, atol=1e-3), (
        float(jnp.max(jnp.abs(out2 - ref2))))

    print("KERNEL_OK")
</pallas_src>

<mosaic_0001>
module attributes {stable_mosaic.version = 11 : i64} {
  func.func @_fused_block_kernel(%arg0: i32, %arg1: i32, %arg2: memref<1x8x16x8xf32, #tpu.memory_space<vmem>>, %arg3: memref<1x1x16x8xf32, #tpu.memory_space<vmem>>, %arg4: memref<1x1x16x8xf32, #tpu.memory_space<vmem>>, %arg5: memref<8x32xf32, #tpu.memory_space<vmem>>, %arg6: memref<1x32xf32, #tpu.memory_space<vmem>>, %arg7: memref<3x3x32xf32, #tpu.memory_space<vmem>>, %arg8: memref<1x32xf32, #tpu.memory_space<vmem>>, %arg9: memref<32x8xf32, #tpu.memory_space<vmem>>, %arg10: memref<1x8xf32, #tpu.memory_space<vmem>>, %arg11: memref<1x8x16x8xf32, #tpu.memory_space<vmem>>, %arg12: memref<10x18x32xf32, #tpu.memory_space<vmem>>) attributes {dimension_semantics = [#tpu.dimension_semantics<parallel>, #tpu.dimension_semantics<parallel>], iteration_bounds = array<i64: 2, 2>, scalar_prefetch = 0 : i64, scratch_operands = 1 : i64, tpu.core_type = #tpu.core_type<tc>, window_params = [{transform_indices = @transform_0, window_bounds = array<i64: 1, 8, 16, 8>}, {transform_indices = @transform_1, window_bounds = array<i64: 1, 1, 16, 8>}, {transform_indices = @transform_2, window_bounds = array<i64: 1, 1, 16, 8>}, {pipeline_mode = #tpu.pipeline_mode<synchronous>, transform_indices = @transform_3, window_bounds = array<i64: 8, 32>}, {pipeline_mode = #tpu.pipeline_mode<synchronous>, transform_indices = @transform_4, window_bounds = array<i64: 1, 32>}, {pipeline_mode = #tpu.pipeline_mode<synchronous>, transform_indices = @transform_5, window_bounds = array<i64: 3, 3, 32>}, {pipeline_mode = #tpu.pipeline_mode<synchronous>, transform_indices = @transform_6, window_bounds = array<i64: 1, 32>}, {pipeline_mode = #tpu.pipeline_mode<synchronous>, transform_indices = @transform_7, window_bounds = array<i64: 32, 8>}, {pipeline_mode = #tpu.pipeline_mode<synchronous>, transform_indices = @transform_8, window_bounds = array<i64: 1, 8>}, {transform_indices = @transform_9, window_bounds = array<i64: 1, 8, 16, 8>}]} {
    %c0 = arith.constant 0 : index
    %c0_0 = arith.constant 0 : index
    %0 = vector.load %arg5[%c0, %c0_0] : memref<8x32xf32, #tpu.memory_space<vmem>>, vector<8x32xf32>
    %1 = arith.truncf %0 : vector<8x32xf32> to vector<8x32xbf16>
    %c0_1 = arith.constant 0 : index
    %c0_2 = arith.constant 0 : index
    %2 = vector.load %arg6[%c0_1, %c0_2] : memref<1x32xf32, #tpu.memory_space<vmem>>, vector<1x32xf32>
    %c0_i32 = arith.constant 0 : i32
    %3 = arith.cmpi sgt, %arg1, %c0_i32 : i32
    %4 = arith.extui %3 : i1 to i32
    %5 = arith.sitofp %4 : i32 to f32
    %c1_i32 = arith.constant 1 : i32
    %6 = arith.cmpi slt, %arg1, %c1_i32 : i32
    %7 = arith.extui %6 : i1 to i32
    %8 = arith.sitofp %7 : i32 to f32
    %c0_3 = arith.constant 0 : index
    %c0_4 = arith.constant 0 : index
    %c0_5 = arith.constant 0 : index
    %c0_6 = arith.constant 0 : index
    %9 = vector.load %arg2[%c0_3, %c0_4, %c0_5, %c0_6] : memref<1x8x16x8xf32, #tpu.memory_space<vmem>>, vector<1x8x16x8xf32>
    %10 = vector.shape_cast %9 : vector<1x8x16x8xf32> to vector<8x16x8xf32>
    %11 = vector.shape_cast %10 : vector<8x16x8xf32> to vector<128x8xf32>
    %12 = arith.truncf %11 : vector<128x8xf32> to vector<128x8xbf16>
    %cst = arith.constant dense<0.000000e+00> : vector<128x32xf32>
    %13 = tpu.matmul %12, %1, %cst {dimension_numbers = #tpu.dot_dimension_numbers<[1], [0], [0], [1], [0, 0, 1, 1], [], []>} : vector<128x8xbf16>, vector<8x32xbf16>, vector<128x32xf32> -> vector<128x32xf32>
    %14 = vector.broadcast %2 : vector<1x32xf32> to vector<128x32xf32>
    %15 = arith.addf %13, %14 : vector<128x32xf32>
    %cst_7 = arith.constant 0.000000e+00 : f32
    %cst_8 = arith.constant 6.000000e+00 : f32
    %16 = vector.broadcast %cst_7 : f32 to vector<128x32xf32>
    %17 = arith.maximumf %16, %15 : vector<128x32xf32>
    %18 = vector.broadcast %cst_8 : f32 to vector<128x32xf32>
    %19 = arith.minimumf %18, %17 : vector<128x32xf32>
    %20 = vector.shape_cast %19 : vector<128x32xf32> to vector<8x16x32xf32>
    %c0_9 = arith.constant 0 : index
    %c0_10 = arith.constant 0 : index
    %c0_11 = arith.constant 0 : index
    %c0_12 = arith.constant 0 : index
    %21 = vector.load %arg3[%c0_9, %c0_10, %c0_11, %c0_12] : memref<1x1x16x8xf32, #tpu.memory_space<vmem>>, vector<1x1x16x8xf32>
    %22 = vector.shape_cast %21 : vector<1x1x16x8xf32> to vector<16x8xf32>
    %23 = arith.truncf %22 : vector<16x8xf32> to vector<16x8xbf16>
    %cst_13 = arith.constant dense<0.000000e+00> : vector<16x32xf32>
    %24 = tpu.matmul %23, %1, %cst_13 {dimension_numbers = #tpu.dot_dimension_numbers<[1], [0], [0], [1], [0, 0, 1, 1], [], []>} : vector<16x8xbf16>, vector<8x32xbf16>, vector<16x32xf32> -> vector<16x32xf32>
    %25 = vector.broadcast %2 : vector<1x32xf32> to vector<16x32xf32>
    %26 = arith.addf %24, %25 : vector<16x32xf32>
    %cst_14 = arith.constant 0.000000e+00 : f32
    %cst_15 = arith.constant 6.000000e+00 : f32
    %27 = vector.broadcast %cst_14 : f32 to vector<16x32xf32>
    %28 = arith.maximumf %27, %26 : vector<16x32xf32>
    %29 = vector.broadcast %cst_15 : f32 to vector<16x32xf32>
    %30 = arith.minimumf %29, %28 : vector<16x32xf32>
    %31 = vector.broadcast %5 : f32 to vector<16x32xf32>
    %32 = arith.mulf %30, %31 : vector<16x32xf32>
    %c0_16 = arith.constant 0 : index
    %c0_17 = arith.constant 0 : index
    %c0_18 = arith.constant 0 : index
    %c0_19 = arith.constant 0 : index
    %33 = vector.load %arg4[%c0_16, %c0_17, %c0_18, %c0_19] : memref<1x1x16x8xf32, #tpu.memory_space<vmem>>, vector<1x1x16x8xf32>
    %34 = vector.shape_cast %33 : vector<1x1x16x8xf32> to vector<16x8xf32>
    %35 = arith.truncf %34 : vector<16x8xf32> to vector<16x8xbf16>
    %cst_20 = arith.constant dense<0.000000e+00> : vector<16x32xf32>
    %36 = tpu.matmul %35, %1, %cst_20 {dimension_numbers = #tpu.dot_dimension_numbers<[1], [0], [0], [1], [0, 0, 1, 1], [], []>} : vector<16x8xbf16>, vector<8x32xbf16>, vector<16x32xf32> -> vector<16x32xf32>
    %37 = vector.broadcast %2 : vector<1x32xf32> to vector<16x32xf32>
    %38 = arith.addf %36, %37 : vector<16x32xf32>
    %cst_21 = arith.constant 0.000000e+00 : f32
    %cst_22 = arith.constant 6.000000e+00 : f32
    %39 = vector.broadcast %cst_21 : f32 to vector<16x32xf32>
    %40 = arith.maximumf %39, %38 : vector<16x32xf32>
    %41 = vector.broadcast %cst_22 : f32 to vector<16x32xf32>
    %42 = arith.minimumf %41, %40 : vector<16x32xf32>
    %43 = vector.broadcast %8 : f32 to vector<16x32xf32>
    %44 = arith.mulf %42, %43 : vector<16x32xf32>
    %cst_23 = arith.constant 0.000000e+00 : f32
    %45 = vector.broadcast %cst_23 : f32 to vector<10x1x32xf32>
    %c0_24 = arith.constant 0 : index
    %c0_25 = arith.constant 0 : index
    %c0_26 = arith.constant 0 : index
    %46 = vector.load %arg12[%c0_24, %c0_25, %c0_26] : memref<10x18x32xf32, #tpu.memory_space<vmem>>, vector<10x1x32xf32>
    tpu.vector_store %arg12[%c0_24, %c0_25, %c0_26], %45 {strides = array<i32>} : memref<10x18x32xf32, #tpu.memory_space<vmem>>, vector<10x1x32xf32>,
    %c0_27 = arith.constant 0 : index
    %c17 = arith.constant 17 : index
    %c0_28 = arith.constant 0 : index
    %47 = vector.load %arg12[%c0_27, %c17, %c0_28] : memref<10x18x32xf32, #tpu.memory_space<vmem>>, vector<10x1x32xf32>
    tpu.vector_store %arg12[%c0_27, %c17, %c0_28], %45 {strides = array<i32>} : memref<10x18x32xf32, #tpu.memory_space<vmem>>, vector<10x1x32xf32>,
    %48 = vector.shape_cast %32 : vector<16x32xf32> to vector<1x16x32xf32>
    %c0_29 = arith.constant 0 : index
    %c1 = arith.constant 1 : index
    %c0_30 = arith.constant 0 : index
    %49 = vector.load %arg12[%c0_29, %c1, %c0_30] : memref<10x18x32xf32, #tpu.memory_space<vmem>>, vector<1x16x32xf32>
    tpu.vector_store %arg12[%c0_29, %c1, %c0_30], %48 {strides = array<i32>} : memref<10x18x32xf32, #tpu.memory_space<vmem>>, vector<1x16x32xf32>,
    %50 = vector.shape_cast %44 : vector<16x32xf32> to vector<1x16x32xf32>
    %c9 = arith.constant 9 : index
    %c1_31 = arith.constant 1 : index
    %c0_32 = arith.constant 0 : index
    %51 = vector.load %arg12[%c9, %c1_31, %c0_32] : memref<10x18x32xf32, #tpu.memory_space<vmem>>, vector<1x16x32xf32>
    tpu.vector_store %arg12[%c9, %c1_31, %c0_32], %50 {strides = array<i32>} : memref<10x18x32xf32, #tpu.memory_space<vmem>>, vector<1x16x32xf32>,
    %c1_33 = arith.constant 1 : index
    %c1_34 = arith.constant 1 : index
    %c0_35 = arith.constant 0 : index
    %52 = vector.load %arg12[%c1_33, %c1_34, %c0_35] : memref<10x18x32xf32, #tpu.memory_space<vmem>>, vector<8x16x32xf32>
    tpu.vector_store %arg12[%c1_33, %c1_34, %c0_35], %20 {strides = array<i32>} : memref<10x18x32xf32, #tpu.memory_space<vmem>>, vector<8x16x32xf32>,
    %c0_36 = arith.constant 0 : index
    %c0_37 = arith.constant 0 : index
    %c0_38 = arith.constant 0 : index
    %53 = vector.load %arg12[%c0_36, %c0_37, %c0_38] : memref<10x18x32xf32, #tpu.memory_space<vmem>>, vector<10x18x32xf32>
    %c0_39 = arith.constant 0 : index
    %c0_40 = arith.constant 0 : index
    %c0_41 = arith.constant 0 : index
    %54 = vector.load %arg7[%c0_39, %c0_40, %c0_41] : memref<3x3x32xf32, #tpu.memory_space<vmem>>, vector<3x3x32xf32>
    %cst_42 = arith.constant 0.000000e+00 : f32
    %55 = vector.broadcast %cst_42 : f32 to vector<8x16x32xf32>
    %56 = vector.extract_strided_slice %53 {offsets = [0, 0, 0], sizes = [8, 16, 32], strides = [1, 1, 1]} : vector<10x18x32xf32> to vector<8x16x32xf32>
    %57 = vector.extract_strided_slice %54 {offsets = [0, 0, 0], sizes = [1, 1, 32], strides = [1, 1, 1]} : vector<3x3x32xf32> to vector<1x1x32xf32>
    %58 = vector.broadcast %57 : vector<1x1x32xf32> to vector<8x16x32xf32>
    %59 = arith.mulf %56, %58 : vector<8x16x32xf32>
    %60 = arith.addf %55, %59 : vector<8x16x32xf32>
    %61 = vector.extract_strided_slice %53 {offsets = [0, 1, 0], sizes = [8, 16, 32], strides = [1, 1, 1]} : vector<10x18x32xf32> to vector<8x16x32xf32>
    %62 = vector.extract_strided_slice %54 {offsets = [0, 1, 0], sizes = [1, 1, 32], strides = [1, 1, 1]} : vector<3x3x32xf32> to vector<1x1x32xf32>
    %63 = vector.broadcast %62 : vector<1x1x32xf32> to vector<8x16x32xf32>
    %64 = arith.mulf %61, %63 : vector<8x16x32xf32>
    %65 = arith.addf %60, %64 : vector<8x16x32xf32>
    %66 = vector.extract_strided_slice %53 {offsets = [0, 2, 0], sizes = [8, 16, 32], strides = [1, 1, 1]} : vector<10x18x32xf32> to vector<8x16x32xf32>
    %67 = vector.extract_strided_slice %54 {offsets = [0, 2, 0], sizes = [1, 1, 32], strides = [1, 1, 1]} : vector<3x3x32xf32> to vector<1x1x32xf32>
    %68 = vector.broadcast %67 : vector<1x1x32xf32> to vector<8x16x32xf32>
    %69 = arith.mulf %66, %68 : vector<8x16x32xf32>
    %70 = arith.addf %65, %69 : vector<8x16x32xf32>
    %71 = vector.extract_strided_slice %53 {offsets = [1, 0, 0], sizes = [8, 16, 32], strides = [1, 1, 1]} : vector<10x18x32xf32> to vector<8x16x32xf32>
    %72 = vector.extract_strided_slice %54 {offsets = [1, 0, 0], sizes = [1, 1, 32], strides = [1, 1, 1]} : vector<3x3x32xf32> to vector<1x1x32xf32>
    %73 = vector.broadcast %72 : vector<1x1x32xf32> to vector<8x16x32xf32>
    %74 = arith.mulf %71, %73 : vector<8x16x32xf32>
    %75 = arith.addf %70, %74 : vector<8x16x32xf32>
    %76 = vector.extract_strided_slice %53 {offsets = [1, 1, 0], sizes = [8, 16, 32], strides = [1, 1, 1]} : vector<10x18x32xf32> to vector<8x16x32xf32>
    %77 = vector.extract_strided_slice %54 {offsets = [1, 1, 0], sizes = [1, 1, 32], strides = [1, 1, 1]} : vector<3x3x32xf32> to vector<1x1x32xf32>
    %78 = vector.broadcast %77 : vector<1x1x32xf32> to vector<8x16x32xf32>
    %79 = arith.mulf %76, %78 : vector<8x16x32xf32>
    %80 = arith.addf %75, %79 : vector<8x16x32xf32>
    %81 = vector.extract_strided_slice %53 {offsets = [1, 2, 0], sizes = [8, 16, 32], strides = [1, 1, 1]} : vector<10x18x32xf32> to vector<8x16x32xf32>
    %82 = vector.extract_strided_slice %54 {offsets = [1, 2, 0], sizes = [1, 1, 32], strides = [1, 1, 1]} : vector<3x3x32xf32> to vector<1x1x32xf32>
    %83 = vector.broadcast %82 : vector<1x1x32xf32> to vector<8x16x32xf32>
    %84 = arith.mulf %81, %83 : vector<8x16x32xf32>
    %85 = arith.addf %80, %84 : vector<8x16x32xf32>
    %86 = vector.extract_strided_slice %53 {offsets = [2, 0, 0], sizes = [8, 16, 32], strides = [1, 1, 1]} : vector<10x18x32xf32> to vector<8x16x32xf32>
    %87 = vector.extract_strided_slice %54 {offsets = [2, 0, 0], sizes = [1, 1, 32], strides = [1, 1, 1]} : vector<3x3x32xf32> to vector<1x1x32xf32>
    %88 = vector.broadcast %87 : vector<1x1x32xf32> to vector<8x16x32xf32>
    %89 = arith.mulf %86, %88 : vector<8x16x32xf32>
    %90 = arith.addf %85, %89 : vector<8x16x32xf32>
    %91 = vector.extract_strided_slice %53 {offsets = [2, 1, 0], sizes = [8, 16, 32], strides = [1, 1, 1]} : vector<10x18x32xf32> to vector<8x16x32xf32>
    %92 = vector.extract_strided_slice %54 {offsets = [2, 1, 0], sizes = [1, 1, 32], strides = [1, 1, 1]} : vector<3x3x32xf32> to vector<1x1x32xf32>
    %93 = vector.broadcast %92 : vector<1x1x32xf32> to vector<8x16x32xf32>
    %94 = arith.mulf %91, %93 : vector<8x16x32xf32>
    %95 = arith.addf %90, %94 : vector<8x16x32xf32>
    %96 = vector.extract_strided_slice %53 {offsets = [2, 2, 0], sizes = [8, 16, 32], strides = [1, 1, 1]} : vector<10x18x32xf32> to vector<8x16x32xf32>
    %97 = vector.extract_strided_slice %54 {offsets = [2, 2, 0], sizes = [1, 1, 32], strides = [1, 1, 1]} : vector<3x3x32xf32> to vector<1x1x32xf32>
    %98 = vector.broadcast %97 : vector<1x1x32xf32> to vector<8x16x32xf32>
    %99 = arith.mulf %96, %98 : vector<8x16x32xf32>
    %100 = arith.addf %95, %99 : vector<8x16x32xf32>
    %c0_43 = arith.constant 0 : index
    %c0_44 = arith.constant 0 : index
    %101 = vector.load %arg8[%c0_43, %c0_44] : memref<1x32xf32, #tpu.memory_space<vmem>>, vector<1x32xf32>
    %102 = vector.shape_cast %101 : vector<1x32xf32> to vector<1x1x32xf32>
    %103 = vector.broadcast %102 : vector<1x1x32xf32> to vector<8x16x32xf32>
    %104 = arith.addf %100, %103 : vector<8x16x32xf32>
    %cst_45 = arith.constant 0.000000e+00 : f32
    %cst_46 = arith.constant 6.000000e+00 : f32
    %105 = vector.broadcast %cst_45 : f32 to vector<8x16x32xf32>
    %106 = arith.maximumf %105, %104 : vector<8x16x32xf32>
    %107 = vector.broadcast %cst_46 : f32 to vector<8x16x32xf32>
    %108 = arith.minimumf %107, %106 : vector<8x16x32xf32>
    %109 = vector.shape_cast %108 : vector<8x16x32xf32> to vector<128x32xf32>
    %c0_47 = arith.constant 0 : index
    %c0_48 = arith.constant 0 : index
    %110 = vector.load %arg9[%c0_47, %c0_48] : memref<32x8xf32, #tpu.memory_space<vmem>>, vector<32x8xf32>
    %111 = arith.truncf %110 : vector<32x8xf32> to vector<32x8xbf16>
    %112 = arith.truncf %109 : vector<128x32xf32> to vector<128x32xbf16>
    %cst_49 = arith.constant dense<0.000000e+00> : vector<128x8xf32>
    %113 = tpu.matmul %112, %111, %cst_49 {dimension_numbers = #tpu.dot_dimension_numbers<[1], [0], [0], [1], [0, 0, 1, 1], [], []>} : vector<128x32xbf16>, vector<32x8xbf16>, vector<128x8xf32> -> vector<128x8xf32>
    %c0_50 = arith.constant 0 : index
    %c0_51 = arith.constant 0 : index
    %114 = vector.load %arg10[%c0_50, %c0_51] : memref<1x8xf32, #tpu.memory_space<vmem>>, vector<1x8xf32>
    %115 = vector.broadcast %114 : vector<1x8xf32> to vector<128x8xf32>
    %116 = arith.addf %113, %115 : vector<128x8xf32>
    %cst_52 = arith.constant 0.000000e+00 : f32
    %cst_53 = arith.constant 6.000000e+00 : f32
    %117 = vector.broadcast %cst_52 : f32 to vector<128x8xf32>
    %118 = arith.maximumf %117, %116 : vector<128x8xf32>
    %119 = vector.broadcast %cst_53 : f32 to vector<128x8xf32>
    %120 = arith.minimumf %119, %118 : vector<128x8xf32>
    %121 = arith.addf %120, %11 : vector<128x8xf32>
    %122 = vector.shape_cast %121 : vector<128x8xf32> to vector<8x16x8xf32>
    %c0_54 = arith.constant 0 : index
    %c0_55 = arith.constant 0 : index
    %c0_56 = arith.constant 0 : index
    %c0_57 = arith.constant 0 : index
    %123 = vector.load %arg11[%c0_54, %c0_55, %c0_56, %c0_57] : memref<1x8x16x8xf32, #tpu.memory_space<vmem>>, vector<1x8x16x8xf32>
    %124 = vector.shape_cast %123 : vector<1x8x16x8xf32> to vector<8x16x8xf32>
    %125 = vector.shape_cast %122 : vector<8x16x8xf32> to vector<1x8x16x8xf32>
    tpu.vector_store %arg11[%c0_54, %c0_55, %c0_56, %c0_57], %125 {strides = array<i32>} : memref<1x8x16x8xf32, #tpu.memory_space<vmem>>, vector<1x8x16x8xf32>,
    return
  }
  func.func @transform_0(%arg0: i32, %arg1: i32) -> (i32, i32, i32, i32) {
    %c0_i32 = arith.constant 0 : i32
    %c0_i32_0 = arith.constant 0 : i32
    %c0_i32_1 = arith.constant 0 : i32
    return %arg0, %arg1, %c0_i32, %c0_i32_0 : i32, i32, i32, i32
  }
  func.func @transform_1(%arg0: i32, %arg1: i32) -> (i32, i32, i32, i32) {
    %c8_i32 = arith.constant 8 : i32
    %0 = arith.muli %arg1, %c8_i32 : i32
    %c1_i32 = arith.constant 1 : i32
    %1 = arith.subi %0, %c1_i32 : i32
    %c0_i32 = arith.constant 0 : i32
    %2 = arith.maxsi %1, %c0_i32 : i32
    %c0_i32_0 = arith.constant 0 : i32
    %c0_i32_1 = arith.constant 0 : i32
    %c0_i32_2 = arith.constant 0 : i32
    return %arg0, %2, %c0_i32_0, %c0_i32_1 : i32, i32, i32, i32
  }
  func.func @transform_2(%arg0: i32, %arg1: i32) -> (i32, i32, i32, i32) {
    %c1_i32 = arith.constant 1 : i32
    %0 = arith.addi %arg1, %c1_i32 : i32
    %c8_i32 = arith.constant 8 : i32
    %1 = arith.muli %0, %c8_i32 : i32
    %c15_i32 = arith.constant 15 : i32
    %2 = arith.minsi %1, %c15_i32 : i32
    %c0_i32 = arith.constant 0 : i32
    %c0_i32_0 = arith.constant 0 : i32
    %c0_i32_1 = arith.constant 0 : i32
    return %arg0, %2, %c0_i32, %c0_i32_0 : i32, i32, i32, i32
  }
  func.func @transform_3(%arg0: i32, %arg1: i32) -> (i32, i32) {
    %c0_i32 = arith.constant 0 : i32
    %c0_i32_0 = arith.constant 0 : i32
    %c0_i32_1 = arith.constant 0 : i32
    return %c0_i32, %c0_i32_0 : i32, i32
  }
  func.func @transform_4(%arg0: i32, %arg1: i32) -> (i32, i32) {
    %c0_i32 = arith.constant 0 : i32
    %c0_i32_0 = arith.constant 0 : i32
    %c0_i32_1 = arith.constant 0 : i32
    return %c0_i32, %c0_i32_0 : i32, i32
  }
  func.func @transform_5(%arg0: i32, %arg1: i32) -> (i32, i32, i32) {
    %c0_i32 = arith.constant 0 : i32
    %c0_i32_0 = arith.constant 0 : i32
    %c0_i32_1 = arith.constant 0 : i32
    %c0_i32_2 = arith.constant 0 : i32
    return %c0_i32, %c0_i32_0, %c0_i32_1 : i32, i32, i32
  }
  func.func @transform_6(%arg0: i32, %arg1: i32) -> (i32, i32) {
    %c0_i32 = arith.constant 0 : i32
    %c0_i32_0 = arith.constant 0 : i32
    %c0_i32_1 = arith.constant 0 : i32
    return %c0_i32, %c0_i32_0 : i32, i32
  }
  func.func @transform_7(%arg0: i32, %arg1: i32) -> (i32, i32) {
    %c0_i32 = arith.constant 0 : i32
    %c0_i32_0 = arith.constant 0 : i32
    %c0_i32_1 = arith.constant 0 : i32
    return %c0_i32, %c0_i32_0 : i32, i32
  }
  func.func @transform_8(%arg0: i32, %arg1: i32) -> (i32, i32) {
    %c0_i32 = arith.constant 0 : i32
    %c0_i32_0 = arith.constant 0 : i32
    %c0_i32_1 = arith.constant 0 : i32
    return %c0_i32, %c0_i32_0 : i32, i32
  }
  func.func @transform_9(%arg0: i32, %arg1: i32) -> (i32, i32, i32, i32) {
    %c0_i32 = arith.constant 0 : i32
    %c0_i32_0 = arith.constant 0 : i32
    %c0_i32_1 = arith.constant 0 : i32
    return %arg0, %arg1, %c0_i32, %c0_i32_0 : i32, i32, i32, i32
  }
}

</mosaic_0001>

<bundles_post_ra>
// kernel: tpu_custom_call.1
= control target key start
LH: loop header
LB: loop body
LE: loop exit
PB: predicated region body
PF: predicated region fallthrough
CT: control target
= control target key end

     0   :  { %s2432_s30 = smov 0   ;;  %s2434_s10 = smov 0   ;;  %s3361_s0 = inlined_call_operand.vmem [shape: f32[2,16,16,8], index: 0, kind: input, shape index: {}]   ;;  %s3362_s1 = inlined_call_operand.vmem [shape: f32[2,16,16,8], index: 1, kind: input, shape index: {}]   ;;  %s3363_s2 = inlined_call_operand.vmem [shape: f32[2,16,16,8], index: 2, kind: input, shape index: {}]   ;;  %s3364_s3 = inlined_call_operand.vmem [shape: f32[8,32], index: 3, kind: input, shape index: {}]   ;;  %s3365_s4 = inlined_call_operand.vmem [shape: f32[1,32], index: 4, kind: input, shape index: {}]   ;;  %s3366_s5 = inlined_call_operand.vmem [shape: f32[3,3,32], index: 5, kind: input, shape index: {}]   ;;  %s3367_s6 = inlined_call_operand.vmem [shape: f32[1,32], index: 6, kind: input, shape index: {}]   ;;  %s3368_s7 = inlined_call_operand.vmem [shape: f32[32,8], index: 7, kind: input, shape index: {}]   ;;  %s3369_s8 = inlined_call_operand.vmem [shape: f32[1,8], index: 8, kind: input, shape index: {}]   ;;  %s3370_s9 = inlined_call_operand.vmem [shape: f32[2,16,16,8], index: 9, kind: output, shape index: {}]  }
   0x1   :  { %s2436_s11 = smov 0   ;;  %s2438_s12 = smov 0  }
   0x2   :  { %s2440_s13 = smov 0  }
   0x3 LB: > { %s28_s14 = sadd.s32 1, %s2370_s11  ;;  %s31_s15 = sadd.s32 1, %s2374_s12  ;;  %s2378_s13 = sphi %s2440_s13, %s19_s13   ;;  %s2374_s12 = sphi %s2438_s12, %s3375_s12   ;;  %s2370_s11 = sphi %s2436_s11, %s3374_s11   ;;  %s2366_s10 = sphi %s2434_s10, %s3373_s10   ;;  %s2362_s30 = sphi %s2432_s30, %s3372_s30  }
   0x4   : > { %p29_p0 = scmp.ge.s32.totalorder %s28_s14, 2  ;;  %p2150_p1 = scmp.ge.s32.totalorder %s2378_s13, 1 }
   0x5   : > { %p373_p2 = scmp.lt.s32.totalorder %s2378_s13, 5 }
   0x6   : > { %s3377_s14 = smov (%p29_p0, %s28_s14), 0  ;;  %s3379_s15 = smov (!%p29_p0, %s31_s15), %s2374_s12 }
   0x7   : > { %p374_p3 = pnand %p2150_p1, %p373_p2  ;;  %p33_p4 = scmp.ge.s32.totalorder %s3379_s15, 2 }
   0x8   : > { %s2468_s18 = sshll.u32 (!%p374_p3), %s2362_s30, 3  ;;  %p446_p5 = scmp.lt.s32.totalorder (!%p374_p3), %s2366_s10, 1 }
   0x9   : > { %s3381_s15 = smov (%p33_p4, %s3379_s15), 0  ;;  %377 = sbr.rel (%p374_p3) target bundleno = 614 (0x266), region = 56 }
   0xa   : > { %p448_p6 = scmp.lt.s32.totalorder (!%p374_p3), %s2468_s18, 15  ;;  %s2206_s23 = sadd.s32 (!%p374_p3), 8, %s2468_s18 }
   0xb   : > { %p2483_p7 = scmp.lt.s32.totalorder (!%p374_p3), %s2206_s23, 15  ;;  %s2156_s29 = sadd.s32 (!%p374_p3), 4294967295, %s2468_s18 }
   0xc   : > { %p458_p8 = scmp.gt.s32.totalorder (!%p374_p3), %s2156_s29, 0  ;;  %p2157_p9 = scmp.lt.s32.totalorder (!%p374_p3), %s2156_s29, 15 }
   0xd   : > { %p508_p10 = scmp.lt.s32.totalorder (!%p374_p3), %s2362_s30, 1  ;;  %p505_p11 = scmp.gt.s32.totalorder (!%p374_p3), %s2362_s30, 0 }
   0xe   : > { %v502_v0 = vld [vmem:[%s3364_s3] sm:$0xff]  ;;  %vm566_vm0 = vcmask 1043456   ;;  %v2380_v2 = vmov 0.0   ;;  %s3383_s10 = smov (!%p446_p5, %s2366_s10), 1  ;;  %vm2381_vm1 = vmmov 0   ;;  %vm541_vm2 = vcmask 64512  }
   0xf   : > { %v503_v1 = vpack.c.bf16 %v502_v0, %v502_v0  ;;  %2254 = vmatprep.subr.bf16.mxu1 %v2380_v2  ;;  %2256 = vmatprep.mubr.msk.bf16.mxu1 %vm2381_vm1, %v2380_v2  ;;  %s449_s19 = scalar_select %p448_p6, %s2468_s18, 15  ;;  %vm807_vm3 = vcmask 253952   ;;  %v1795_v34 = vld [vmem:[%s3368_s7 + $0x10] sm:$0xff]  ;;  %v1796_v35 = vld [vmem:[%s3368_s7 + $0x18] sm:$0xff]  ;;  %v1793_v36 = vld [vmem:[%s3368_s7] sm:$0xff]  ;;  %v884_v41 = vlaneseq  ;;  %vm828_vm4 = vcmask 261120  }
  0x10   : > { %s2475_s20 = sshll.u32 %s3383_s10, 5  ;;  %s3385_s23 = smov (!%p2483_p7, %s2206_s23), 15  ;;  %810 = vst.msk [vmem:[#allocation2 + $0x30] sm:$0x1] %vm807_vm3, %v2380_v2  ;;  %808 = vst.msk [vmem:[#allocation2] sm:$0x1] %vm807_vm3, %v2380_v2  ;;  %v1798_v37 = vpack.c.bf16 %v1796_v35, %v1795_v34 }
  0x11   : > { %v568_v3 = vsel %vm566_vm0, %v503_v1, 0  ;;  %2280 = vmatprep.subr.msk.bf16.mxu0 %vm566_vm0, %v503_v1  ;;  %s2152_s21 = sshll.u32 %s449_s19, 1  ;;  %s3387_s23 = smov (!%p2483_p7, %s3385_s23), 15  ;;  %809 = vst.msk [vmem:[#allocation2 + $0x18] sm:$0x1] %vm807_vm3, %v2380_v2  ;;  %v1794_v38 = vld [vmem:[%s3368_s7 + $0x8] sm:$0xff] }
  0x12   : > { %2231 = vmatpush3.bf16.msra.mxu0 %v568_v3  ;;  %2255 = vmatpush3.bf16.msra.mxu1 %v568_v3  ;;  %s2479_s22 = sadd.s32 %s2475_s20, %s2152_s21  ;;  %s2169_s10 = sshll.u32 %s3387_s23, 1  ;;  %811 = vst.msk [vmem:[#allocation2 + $0x48] sm:$0x1] %vm807_vm3, %v2380_v2  ;;  %812 = vst.msk [vmem:[#allocation2 + $0x60] sm:$0x1] %vm807_vm3, %v2380_v2  ;;  %v1797_v39 = vpack.c.bf16 %v1794_v38, %v1793_v36  ;;  %v885_v45 = vshrl.u32 %v884_v41, 7 }
  0x13   : > { %2248 = vmatprep.subr.bf16.mxu0 %v2380_v2  ;;  %s2154_s24 = sshll.u32 %s2479_s22, 3  ;;  %s483_s16 = sadd.s32 %s2169_s10, %s2475_s20  ;;  %813 = vst.msk [vmem:[#allocation2 + $0x78] sm:$0x1] %vm807_vm3, %v2380_v2  ;;  %814 = vst.msk [vmem:[#allocation2 + $0x90] sm:$0x1] %vm807_vm3, %v2380_v2  ;;  %2260 = vmatprep.subr.bf16.mxu1 %v1798_v37  ;;  %vm972_vm5 = vcmask 1046528  }
  0x14   : > { %s2492_s28 = scalar_lea.vmem %s3361_s0, %s2154_s24  ;;  %s2171_s17 = sshll.u32 %s483_s16, 3  ;;  %815 = vst.msk [vmem:[#allocation2 + $0xa8] sm:$0x1] %vm807_vm3, %v2380_v2  ;;  %816 = vst.msk [vmem:[#allocation2 + $0xc0] sm:$0x1] %vm807_vm3, %v2380_v2  ;;  %v886_v53 = vsub.s32 0, %v885_v45 }
  0x15   : > { %v511_v4 = vld [vmem:[%s2492_s28] sm:$0xff]  ;;  %v512_v5 = vld [vmem:[%s2492_s28 + $0x8] sm:$0xff]  ;;  %v513_v6 = vld [vmem:[%s2492_s28 + $0x10] sm:$0xff]  ;;  %s485_s21 = scalar_lea.vmem %s3363_s2, %s2171_s17  ;;  %s3389_s29 = smov (!%p458_p8, %s2156_s29), 0  ;;  %817 = vst.msk [vmem:[#allocation2 + $0xd8] sm:$0x1] %vm807_vm3, %v2380_v2 }
  0x16   : > { %v527_v7 = vpack.c.bf16 %v512_v5, %v511_v4  ;;  %v514_v8 = vld [vmem:[%s2492_s28 + $0x18] sm:$0xff]  ;;  %v515_v9 = vld [vmem:[%s2492_s28 + $0x20] sm:$0xff]  ;;  %v516_v10 = vld [vmem:[%s2492_s28 + $0x28] sm:$0xff]  ;;  %s3391_s29 = smov (!%p2157_p9, %s3389_s29), 15  ;;  %818 = vst.msk [vmem:[#allocation2 + $0x11] sm:$0x1] %vm807_vm3, %v2380_v2  ;;  %s3283_s17 = scalar_lea.vmem %s3370_s9, %s2154_s24 }
  0x17   : > { %v528_v11 = vpack.c.bf16 %v514_v8, %v513_v6  ;;  %v529_v12 = vpack.c.bf16 %v516_v10, %v515_v9  ;;  %v517_v13 = vld [vmem:[%s2492_s28 + $0x30] sm:$0xff]  ;;  %v518_v14 = vld [vmem:[%s2492_s28 + $0x38] sm:$0xff]  ;;  %v519_v15 = vld [vmem:[%s2492_s28 + $0x40] sm:$0xff]  ;;  %s2162_s23 = sshll.u32 %s3391_s29, 1  ;;  %819 = vst.msk [vmem:[#allocation2 + $0x29] sm:$0x1] %vm807_vm3, %v2380_v2 }
  0x18   : > { %2232 = vmatprep.mubr.msk.bf16.mxu0 %vm541_vm2, %v527_v7  ;;  %v520_v16 = vld [vmem:[%s2492_s28 + $0x48] sm:$0xff]  ;;  %v530_v17 = vpack.c.bf16 %v518_v14, %v517_v13  ;;  %v753_v19 = vld [vmem:[%s485_s21] sm:$0xff]  ;;  %v521_v22 = vld [vmem:[%s2492_s28 + $0x50] sm:$0xff]  ;;  %s466_s25 = sadd.s32 %s2162_s23, %s2475_s20  ;;  %820 = vst.msk [vmem:[#allocation2 + $0x41] sm:$0x1] %vm807_vm3, %v2380_v2  ;;  %v922_v54 = vsub.s32 1, %v885_v45 }
  0x19   : > { %2233 = vmatmul.mubr.msk.bf16.vlgmr.msra.gmra.mxu0 %vm541_vm2, %v528_v11  ;;  %v531_v18 = vpack.c.bf16 %v520_v16, %v519_v15  ;;  %v754_v20 = vld [vmem:[%s485_s21 + $0x8] sm:$0xff]  ;;  %v522_v23 = vld [vmem:[%s2492_s28 + $0x58] sm:$0xff]  ;;  %v523_v24 = vld [vmem:[%s2492_s28 + $0x60] sm:$0xff]  ;;  %s2164_s26 = sshll.u32 %s466_s25, 3  ;;  %821 = vst.msk [vmem:[#allocation2 + $0x59] sm:$0x1] %vm807_vm3, %v2380_v2 }
  0x1a   : > { %2249 = vmatpush3.bf16.msra.mxu0 %v568_v3  ;;  %2236 = vmatprep.mubr.msk.bf16.mxu0 %vm541_vm2, %v529_v12  ;;  %v755_v21 = vpack.c.bf16 %v754_v20, %v753_v19  ;;  %v524_v25 = vld [vmem:[%s2492_s28 + $0x68] sm:$0xff]  ;;  %v532_v26 = vpack.c.bf16 %v522_v23, %v521_v22  ;;  %v525_v28 = vld [vmem:[%s2492_s28 + $0x70] sm:$0xff]  ;;  %v526_v29 = vld [vmem:[%s2492_s28 + $0x78] sm:$0xff]  ;;  %s468_s16 = scalar_lea.vmem %s3362_s1, %s2164_s26  ;;  %822 = vst.msk [vmem:[#allocation2 + $0x71] sm:$0x1] %vm807_vm3, %v2380_v2  ;;  %v1047_v55 = vsub.s32 2, %v885_v45 }
  0x1b   : > { %v533_v27 = vpack.c.bf16 %v524_v25, %v523_v24  ;;  %v534_v30 = vpack.c.bf16 %v526_v29, %v525_v28  ;;  %v699_v31 = vld [vmem:[%s468_s16] sm:$0xff]  ;;  %v700_v32 = vld [vmem:[%s468_s16 + $0x8] sm:$0xff]  ;;  %823 = vst.msk [vmem:[#allocation2 + $0x89] sm:$0x1] %vm807_vm3, %v2380_v2  ;;  %824 = vst.msk [vmem:[#allocation2 + $0xa1] sm:$0x1] %vm807_vm3, %v2380_v2 }
  0x1c   : > { %2257 = vmatmul.mubr.msk.bf16.vlgmr.msra.gmra.mxu1 %vm541_vm2, %v755_v21  ;;  %v701_v33 = vpack.c.bf16 %v700_v32, %v699_v31  ;;  %825 = vst.msk [vmem:[#allocation2 + $0xb9] sm:$0x1] %vm807_vm3, %v2380_v2  ;;  %826 = vst.msk [vmem:[#allocation2 + $0xd1] sm:$0x1] %vm807_vm3, %v2380_v2  ;;  %v2590_v40 = vld [vmem:[%s3365_s4] ss:$0 sm:$0xff] }
  0x1d   : > { %827 = vst.msk [vmem:[#allocation2 + $0xe9] sm:$0x1] %vm807_vm3, %v2380_v2  ;;  %2261 = vmatpush3.bf16.msra.mxu1 %v1798_v37  ;;  %s2596_s10 = scalar_select %p508_p10, 1, 0  ;;  %v881_v59 = vld [vmem:[%s3366_s5] sm:$0x7] }
  0x1e   : > { %2262 = vmatprep.subr.bf16.mxu1 %v1797_v39  ;;  %s2599_s16 = scalar_select %p505_p11, 1, 0  ;;  %v882_v60 = vld [vmem:[%s3366_s5 + $0x4] sm:$0x7]  ;;  %v883_v3 = vld [vmem:[%s3366_s5 + $0x8] sm:$0x7]  ;;  %v2617_v6 = vrot.slane %v881_v59, %v886_v53  ;;  %v2619_v7 = vrot.slane %v881_v59, %v922_v54  ;;  %v2621_v8 = vrot.slane %v881_v59, %v1047_v55 }
  0x1f   : > { %s510_s18 = scvt.s32.f32 %s2596_s10  ;;  %v2623_v9 = vrot.slane %v882_v60, %v886_v53  ;;  %v2631_v19 = vrot.slane %v883_v3, %v1047_v55  ;;  %v2640_v29 = vrot.slane %v882_v60, %v922_v54  ;;  %vm1097_vm6 = vcmask 1045504  }
  0x20   : > { %s507_s23 = scvt.s32.f32 %s2599_s16 }
  0x21   : > { %2237 = vmatmul.mubr.msk.bf16.gmra.mxu0 %vm541_vm2, %v530_v17  ;;  %2263 = vmatpush3.bf16.msra.mxu1 %v1797_v39  ;;  %v804_v15 = vstv %s510_s18  ;;  %v2627_v17 = vrot.slane %v883_v3, %v886_v53 }
  0x22   : > { %2240 = vmatprep.mubr.msk.bf16.mxu0 %vm541_vm2, %v531_v18  ;;  %v2629_v18 = vrot.slane %v883_v3, %v922_v54 }
  0x29   : > { %2241 = vmatmul.mubr.msk.bf16.gmra.mxu0 %vm541_vm2, %v532_v26  ;;  %v2637_v26 = vstv %s507_s23 }
  0x2a   : > { %2244 = vmatprep.mubr.msk.bf16.mxu0 %vm541_vm2, %v533_v27 }
  0x31   : > { %2245 = vmatmul.mubr.msk.bf16.gmra.mxu0 %vm541_vm2, %v534_v30  ;;  %v2642_v30 = vrot.slane %v882_v60, %v1047_v55 }
  0x32   : > { %2250 = vmatprep.mubr.msk.bf16.mxu0 %vm2381_vm1, %v2380_v2 }
  0x39   : > { %2251 = vmatmul.mubr.msk.bf16.vlgmr.msra.gmra.mxu0 %vm541_vm2, %v701_v33 }
  0xd9   : > { %v2234_v42 = vpop.f32.mrf.mxu0 }
  0xda   : > { %v613_v43 = vadd.f32 %v2234_v42, %v2590_v40 }
  0xdb   : > { %v604_v44 = vpop.f32.mrf.mxu0 }
  0xdc   : > { %v669_v46 = vmax.f32 %v613_v43, 0.0  ;;  %v605_v47 = vadd.f32 %v2590_v40, %v604_v44  ;;  %v793_v62 = vpop.f32.mrf.mxu1 }
  0xdd   : > { %v2235_v48 = vpop.f32.mrf.mxu0  ;;  %v794_v2 = vadd.f32 %v2590_v40, %v793_v62 }
  0xde   : > { %v685_v49 = vmin.f32 %v669_v46, 6.0  ;;  %v667_v50 = vmax.f32 %v605_v47, 0.0  ;;  %v616_v51 = vadd.f32 %v2235_v48, %v2590_v40  ;;  %v2258_v5 = vpop.f32.mrf.mxu1 }
  0xdf   : > { %v607_v52 = vpop.f32.mrf.mxu0  ;;  %v800_v13 = vmax.f32 %v794_v2, 0.0 }
  0xe0   : > { %837 = vst.msk [vmem:[#allocation2 + $0x31] sm:$0xff] %vm828_vm4, %v685_v49  ;;  %v683_v56 = vmin.f32 %v667_v50, 6.0  ;;  %v670_v57 = vmax.f32 %v616_v51, 0.0  ;;  %v608_v58 = vadd.f32 %v2590_v40, %v607_v52  ;;  %v796_v16 = vpop.f32.mrf.mxu1 }
  0xe1   : > { %v2238_v61 = vpop.f32.mrf.mxu0  ;;  %v802_v23 = vmin.f32 %v800_v13, 6.0  ;;  %v797_v27 = vadd.f32 %v2590_v40, %v796_v16 }
  0xe2   : > { %835 = vst.msk [vmem:[#allocation2 + $0x19] sm:$0xff] %vm828_vm4, %v683_v56  ;;  %v686_v63 = vmin.f32 %v670_v57, 6.0  ;;  %v668_v0 = vmax.f32 %v608_v58, 0.0  ;;  %v629_v1 = vadd.f32 %v2238_v61, %v2590_v40  ;;  %v2259_v28 = vpop.f32.mrf.mxu1 }
  0xe3   : > { %v620_v4 = vpop.f32.mrf.mxu0  ;;  %v805_v34 = vmul.f32 %v804_v15, %v802_v23  ;;  %v801_v36 = vmax.f32 %v797_v27, 0.0 }
  0xe4   : > { %838 = vst.msk [vmem:[#allocation2 + $0x39] sm:$0xff] %vm828_vm4, %v686_v63  ;;  %v684_v10 = vmin.f32 %v668_v0, 6.0  ;;  %v673_v11 = vmax.f32 %v629_v1, 0.0  ;;  %v621_v12 = vadd.f32 %v2590_v40, %v620_v4 }
  0xe5   : > { %v2239_v14 = vpop.f32.mrf.mxu0  ;;  %832 = vst.msk [vmem:[#allocation2 + $0xd9] sm:$0xff] %vm828_vm4, %v805_v34  ;;  %v803_v48 = vmin.f32 %v801_v36, 6.0 }
  0xe6   : > { %836 = vst.msk [vmem:[#allocation2 + $0x21] sm:$0xff] %vm828_vm4, %v684_v10  ;;  %v689_v20 = vmin.f32 %v673_v11, 6.0  ;;  %v671_v21 = vmax.f32 %v621_v12, 0.0  ;;  %v632_v22 = vadd.f32 %v2239_v14, %v2590_v40 }
  0xe7   : > { %v2635_v24 = vld [vmem:[#allocation2 + $0x30] sm:$0xff]  ;;  %v623_v25 = vpop.f32.mrf.mxu0  ;;  %v806_v57 = vmul.f32 %v804_v15, %v803_v48 }
  0xe8   : > { %841 = vst.msk [vmem:[#allocation2 + $0x61] sm:$0xff] %vm828_vm4, %v689_v20  ;;  %v687_v31 = vmin.f32 %v671_v21, 6.0  ;;  %v674_v32 = vmax.f32 %v632_v22, 0.0  ;;  %v624_v33 = vadd.f32 %v2590_v40, %v623_v25  ;;  %v2650_v38 = vmul.f32 %v2627_v17, %v2635_v24 }
  0xe9   : > { %v2242_v35 = vpop.f32.mrf.mxu0  ;;  %v2646_v37 = vld [vmem:[#allocation2 + $0x18] sm:$0xff]  ;;  %v2654_v39 = vmul.f32 %v2629_v18, %v2635_v24  ;;  %v2658_v41 = vmul.f32 %v2631_v19, %v2635_v24  ;;  %833 = vst.msk [vmem:[#allocation2 + $0xe1] sm:$0xff] %vm828_vm4, %v806_v57 }
  0xea   : > { %839 = vst.msk [vmem:[#allocation2 + $0x49] sm:$0xff] %vm828_vm4, %v687_v31  ;;  %v690_v42 = vmin.f32 %v674_v32, 6.0  ;;  %v672_v43 = vmax.f32 %v624_v33, 0.0  ;;  %v645_v44 = vadd.f32 %v2242_v35, %v2590_v40  ;;  %v2665_v45 = vmul.f32 %v2623_v9, %v2646_v37 }
  0xeb   : > { %v2667_v46 = vld [vmem:[#allocation2 + $0x38] sm:$0xff]  ;;  %v636_v47 = vpop.f32.mrf.mxu0  ;;  %v1210_v49 = vmul.f32 %v2640_v29, %v2646_v37  ;;  %v1334_v50 = vmul.f32 %v2642_v30, %v2646_v37  ;;  %v1542_v51 = vrot.slane %v2654_v39, 1  ;;  %v2702_v15 = vld [vmem:[#allocation2 + $0x40] sm:$0x3] }
  0xec   : > { %842 = vst.msk [vmem:[#allocation2 + $0x69] sm:$0xff] %vm828_vm4, %v690_v42  ;;  %v688_v52 = vmin.f32 %v672_v43, 6.0  ;;  %v677_v53 = vmax.f32 %v645_v44, 0.0  ;;  %v637_v54 = vadd.f32 %v2590_v40, %v636_v47  ;;  %v2678_v55 = vmul.f32 %v2627_v17, %v2667_v46 }
  0xed   : > { %v2243_v56 = vpop.f32.mrf.mxu0  ;;  %v2680_v58 = vld [vmem:[#allocation2 + $0x20] sm:$0xff]  ;;  %v856_v59 = vld [vmem:[#allocation2 + $0x28] sm:$0x3]  ;;  %v1258_v60 = vrot.slane %v1210_v49, 1  ;;  %v1382_v61 = vrot.slane %v1334_v50, 2  ;;  %v1495_v62 = vmul.f32 %v2629_v18, %v2667_v46  ;;  %v1496_v42 = vmul.f32 %v2629_v18, %v2702_v15 }
  0xee   : > { %840 = vst.msk [vmem:[#allocation2 + $0x51] sm:$0xff] %vm828_vm4, %v688_v52  ;;  %v693_v63 = vmin.f32 %v677_v53, 6.0  ;;  %v675_v0 = vmax.f32 %v637_v54, 0.0  ;;  %v648_v1 = vadd.f32 %v2243_v56, %v2590_v40  ;;  %v2687_v2 = vmul.f32 %v2619_v7, %v856_v59 }
  0xef   : > { %v639_v3 = vpop.f32.mrf.mxu0  ;;  %v2691_v4 = vmul.f32 %v2621_v8, %v856_v59  ;;  %v2695_v5 = vmul.f32 %v2623_v9, %v2680_v58  ;;  %v1211_v10 = vmul.f32 %v2640_v29, %v2680_v58  ;;  %v1212_v11 = vmul.f32 %v2640_v29, %v856_v59 }
  0xf0   : > { %845 = vst.msk [vmem:[#allocation2 + $0x91] sm:$0xff] %vm828_vm4, %v693_v63  ;;  %v691_v12 = vmin.f32 %v675_v0, 6.0  ;;  %v678_v13 = vmax.f32 %v648_v1, 0.0  ;;  %v640_v14 = vadd.f32 %v2590_v40, %v639_v3  ;;  %v981_v16 = vrot.slane %v2687_v2, 1 }
  0xf1   : > { %v2246_v20 = vpop.f32.mrf.mxu0  ;;  %v1106_v21 = vrot.slane %v2691_v4, 2  ;;  %v1259_v22 = vrot.slane %v1211_v10, 1  ;;  %v1261_v23 = vrot.slane %v1212_v11, 1  ;;  %v1335_v25 = vmul.f32 %v2642_v30, %v2680_v58  ;;  %v2786_v2 = vld [vmem:[#allocation2 + $0x48] sm:$0xff] }
  0xf2   : > { %843 = vst.msk [vmem:[#allocation2 + $0x79] sm:$0xff] %vm828_vm4, %v691_v12  ;;  %v694_v27 = vmin.f32 %v678_v13, 6.0  ;;  %v676_v28 = vmax.f32 %v640_v14, 0.0  ;;  %v661_v31 = vadd.f32 %v2246_v20, %v2590_v40  ;;  %v1336_v32 = vmul.f32 %v2642_v30, %v856_v59 }
  0xf3   : > { %v652_v33 = vpop.f32.mrf.mxu0  ;;  %v2712_v34 = vsel %vm972_vm5, %v1258_v60, %v1259_v22  ;;  %v2715_v35 = vsel %vm972_vm5, %v1259_v22, %v1261_v23  ;;  %v1383_v36 = vrot.slane %v1335_v25, 2  ;;  %v1543_v52 = vrot.slane %v1495_v62, 1 }
  0xf4   : > { %846 = vst.msk [vmem:[#allocation2 + $0x99] sm:$0xff] %vm828_vm4, %v694_v27  ;;  %v692_v43 = vmin.f32 %v676_v28, 6.0  ;;  %v681_v44 = vmax.f32 %v661_v31, 0.0  ;;  %v653_v47 = vadd.f32 %v2590_v40, %v652_v33  ;;  %v1385_v48 = vrot.slane %v1336_v32, 2 }
  0xf5   : > { %v2247_v49 = vpop.f32.mrf.mxu0  ;;  %v2722_v50 = vsel %vm1097_vm6, %v1382_v61, %v1383_v36  ;;  %v1545_v53 = vrot.slane %v1496_v42, 1  ;;  %v1619_v54 = vmul.f32 %v2631_v19, %v2667_v46  ;;  %v2734_v61 = vsel %vm972_vm5, %v1542_v51, %v1543_v52 }
  0xf6   : > { %844 = vst.msk [vmem:[#allocation2 + $0x81] sm:$0xff] %vm828_vm4, %v692_v43  ;;  %v697_v56 = vmin.f32 %v681_v44, 6.0  ;;  %v679_v57 = vmax.f32 %v653_v47, 0.0  ;;  %v664_v59 = vadd.f32 %v2247_v49, %v2590_v40  ;;  %v2729_v60 = vsel %vm1097_vm6, %v1383_v36, %v1385_v48 }
  0xf7   : > { %v655_v63 = vpop.f32.mrf.mxu0  ;;  %v2737_v62 = vsel %vm972_vm5, %v1543_v52, %v1545_v53  ;;  %v1620_v0 = vmul.f32 %v2631_v19, %v2702_v15  ;;  %v1666_v1 = vrot.slane %v2658_v41, 2  ;;  %v1667_v12 = vrot.slane %v1619_v54, 2 }
  0xf8   : > { %849 = vst.msk [vmem:[#allocation2 + $0xc1] sm:$0xff] %vm828_vm4, %v697_v56  ;;  %v695_v3 = vmin.f32 %v679_v57, 6.0  ;;  %v682_v10 = vmax.f32 %v664_v59, 0.0  ;;  %v656_v11 = vadd.f32 %v2590_v40, %v655_v63  ;;  %v890_v51 = vmul.f32 %v2617_v6, %v2646_v37 }
  0xf9   : > { %v739_v13 = vpop.f32.mrf.mxu0  ;;  %v1669_v39 = vrot.slane %v1620_v0, 2  ;;  %v891_v14 = vmul.f32 %v2617_v6, %v2680_v58  ;;  %v927_v20 = vmul.f32 %v2619_v7, %v2646_v37  ;;  %v2753_v25 = vsel %vm1097_vm6, %v1666_v1, %v1667_v12 }
  0xfa   : > { %847 = vst.msk [vmem:[#allocation2 + $0xa9] sm:$0xff] %vm828_vm4, %v695_v3  ;;  %v698_v41 = vmin.f32 %v682_v10, 6.0  ;;  %v680_v22 = vmax.f32 %v656_v11, 0.0  ;;  %v740_v23 = vadd.f32 %v2590_v40, %v739_v13  ;;  %v928_v31 = vmul.f32 %v2619_v7, %v2680_v58 }
  0xfb   : > { %v2252_v27 = vpop.f32.mrf.mxu0  ;;  %v2756_v28 = vsel %vm1097_vm6, %v1667_v12, %v1669_v39  ;;  %v978_v32 = vrot.slane %v927_v20, 1  ;;  %v1052_v33 = vmul.f32 %v2621_v8, %v2646_v37  ;;  %v1053_v43 = vmul.f32 %v2621_v8, %v2680_v58 }
  0xfc   : > { %850 = vst.msk [vmem:[#allocation2 + $0xc9] sm:$0xff] %vm828_vm4, %v698_v41  ;;  %v696_v36 = vmin.f32 %v680_v22, 6.0  ;;  %v746_v42 = vmax.f32 %v740_v23, 0.0  ;;  %v1176_v44 = vmul.f32 %v2623_v9, %v2635_v24  ;;  %v979_v48 = vrot.slane %v928_v31, 1 }
  0xfd   : > { %v742_v47 = vpop.f32.mrf.mxu0  ;;  %v1103_v49 = vrot.slane %v1052_v33, 2  ;;  %v1177_v52 = vmul.f32 %v2623_v9, %v2667_v46  ;;  %v1213_v53 = vmul.f32 %v2640_v29, %v2635_v24  ;;  %v1104_v56 = vrot.slane %v1053_v43, 2 }
  0xfe   : > { %848 = vst.msk [vmem:[#allocation2 + $0xb1] sm:$0xff] %vm828_vm4, %v696_v36  ;;  %v748_v37 = vmin.f32 %v746_v42, 6.0  ;;  %v743_v54 = vadd.f32 %v2590_v40, %v742_v47  ;;  %v1214_v58 = vmul.f32 %v2640_v29, %v2667_v46  ;;  %v980_v59 = vsel %vm972_vm5, %v978_v32, %v979_v48  ;;  %v2800_v32 = vld [vmem:[#allocation2 + $0x58] sm:$0x3] }
  0xff   : > { %v2253_v57 = vpop.f32.mrf.mxu0  ;;  %v982_v63 = vsel %vm972_vm5, %v979_v48, %v981_v16  ;;  %v1215_v0 = vmul.f32 %v2640_v29, %v2702_v15  ;;  %v1263_v1 = vrot.slane %v1213_v53, 1  ;;  %v1031_v11 = vadd.f32 %v980_v59, %v890_v51  ;;  %v2788_v16 = vld [vmem:[#allocation2 + $0x50] sm:$0xff] }
 0x100   : > { %v751_v3 = vmul.f32 %v2637_v26, %v748_v37  ;;  %v747_v10 = vmax.f32 %v743_v54, 0.0  ;;  %v1032_v40 = vadd.f32 %v982_v63, %v891_v14  ;;  %v1105_v12 = vsel %vm1097_vm6, %v1103_v49, %v1104_v56 }
 0x101   : > { %v1107_v13 = vsel %vm1097_vm6, %v1104_v56, %v1106_v21  ;;  %v1264_v39 = vrot.slane %v1214_v58, 1  ;;  %v1266_v20 = vrot.slane %v1215_v0, 1  ;;  %v1156_v22 = vadd.f32 %v1105_v12, %v1031_v11 }
 0x102   : > { %829 = vst.msk [vmem:[#allocation2 + $0x1] sm:$0xff] %vm828_vm4, %v751_v3  ;;  %v749_v41 = vmin.f32 %v747_v10, 6.0  ;;  %v1157_v23 = vadd.f32 %v1107_v13, %v1032_v40  ;;  %v1337_v51 = vmul.f32 %v2642_v30, %v2635_v24  ;;  %v1338_v21 = vmul.f32 %v2642_v30, %v2667_v46 }
 0x103   : > { %v1265_v14 = vsel %vm972_vm5, %v1263_v1, %v1264_v39  ;;  %v1267_v4 = vsel %vm972_vm5, %v1264_v39, %v1266_v20  ;;  %v1339_v27 = vmul.f32 %v2642_v30, %v2702_v15  ;;  %v1192_v33 = vadd.f32 %v1176_v44, %v1156_v22 }
 0x104   : > { %v752_v31 = vmul.f32 %v2637_v26, %v749_v41  ;;  %v1193_v36 = vadd.f32 %v1177_v52, %v1157_v23  ;;  %v1387_v42 = vrot.slane %v1337_v51, 2  ;;  %v1388_v43 = vrot.slane %v1338_v21, 2 }
 0x105   : > { %v1390_v47 = vrot.slane %v1339_v27, 2  ;;  %v1460_v48 = vmul.f32 %v2627_v17, %v2786_v2  ;;  %v1461_v49 = vmul.f32 %v2627_v17, %v2788_v16  ;;  %v1316_v53 = vadd.f32 %v1265_v14, %v1192_v33 }
 0x106   : > { %830 = vst.msk [vmem:[#allocation2 + $0x9] sm:$0xff] %vm828_vm4, %v752_v31  ;;  %v1317_v37 = vadd.f32 %v1267_v4, %v1193_v36  ;;  %v1497_v26 = vmul.f32 %v2629_v18, %v2786_v2  ;;  %v1498_v44 = vmul.f32 %v2629_v18, %v2788_v16  ;;  %v1389_v52 = vsel %vm1097_vm6, %v1387_v42, %v1388_v43 }
 0x107   : > { %v1391_v54 = vsel %vm1097_vm6, %v1388_v43, %v1390_v47  ;;  %v1499_v56 = vmul.f32 %v2629_v18, %v2800_v32  ;;  %v1621_v58 = vmul.f32 %v2631_v19, %v2786_v2  ;;  %v1440_v57 = vadd.f32 %v1389_v52, %v1316_v53 }
 0x108   : > { %v1441_v59 = vadd.f32 %v1391_v54, %v1317_v37  ;;  %v1547_v63 = vrot.slane %v1497_v26, 1  ;;  %v1548_v0 = vrot.slane %v1498_v44, 1  ;;  %v1622_v10 = vmul.f32 %v2631_v19, %v2788_v16  ;;  %v2838_v26 = vld [vmem:[%s3367_s6] ss:$0 sm:$0xff] }
 0x109   : > { %v851_v1 = vld [vmem:[#allocation2] sm:$0xff]  ;;  %v1550_v3 = vrot.slane %v1499_v56, 1  ;;  %v1623_v11 = vmul.f32 %v2631_v19, %v2800_v32  ;;  %v1671_v40 = vrot.slane %v1621_v58, 2  ;;  %v1476_v20 = vadd.f32 %v1460_v48, %v1440_v57 }
 0x10a   : > { %v888_v12 = vmul.f32 %v2617_v6, %v851_v1  ;;  %v924_v13 = vmul.f32 %v2619_v7, %v851_v1  ;;  %v1049_v39 = vmul.f32 %v2621_v8, %v851_v1  ;;  %v1477_v41 = vadd.f32 %v1461_v49, %v1441_v59 }
 0x10b   : > { %v1549_v22 = vsel %vm972_vm5, %v1547_v63, %v1548_v0  ;;  %v1551_v23 = vsel %vm972_vm5, %v1548_v0, %v1550_v3  ;;  %v1672_v51 = vrot.slane %v1622_v10, 2  ;;  %v1674_v27 = vrot.slane %v1623_v11, 2 }
 0x10c   : > { %v973_v14 = vrot.slane %v924_v13, 1  ;;  %v1098_v4 = vrot.slane %v1049_v39, 2  ;;  %v1600_v21 = vadd.f32 %v1549_v22, %v1476_v20  ;;  %v1601_v36 = vadd.f32 %v1551_v23, %v1477_v41 }
 0x10d   : > { %v852_v31 = vld [vmem:[#allocation2 + $0x8] sm:$0xff]  ;;  %v853_v33 = vld [vmem:[#allocation2 + $0x10] sm:$0x3]  ;;  %v1673_v42 = vsel %vm1097_vm6, %v1671_v40, %v1672_v51  ;;  %v892_v43 = vmul.f32 %v2617_v6, %v2635_v24  ;;  %v893_v47 = vmul.f32 %v2617_v6, %v2667_v46  ;;  %v1675_v52 = vsel %vm1097_vm6, %v1672_v51, %v1674_v27 }
 0x10e   : > { %v889_v48 = vmul.f32 %v2617_v6, %v852_v31  ;;  %v925_v49 = vmul.f32 %v2619_v7, %v852_v31  ;;  %v926_v53 = vmul.f32 %v2619_v7, %v853_v33  ;;  %v1050_v37 = vmul.f32 %v2621_v8, %v852_v31 }
 0x10f   : > { %v1051_v44 = vmul.f32 %v2621_v8, %v853_v33  ;;  %v1724_v54 = vadd.f32 %v1673_v42, %v1600_v21  ;;  %v930_v56 = vmul.f32 %v2619_v7, %v2635_v24  ;;  %v1725_v63 = vadd.f32 %v1675_v52, %v1601_v36 }
 0x110   : > { %v974_v58 = vrot.slane %v925_v49, 1  ;;  %v976_v57 = vrot.slane %v926_v53, 1  ;;  %v1099_v59 = vrot.slane %v1050_v37, 2  ;;  %v931_v3 = vmul.f32 %v2619_v7, %v2667_v46 }
 0x111   : > { %v1101_v0 = vrot.slane %v1051_v44, 2  ;;  %v1747_v1 = vadd.f32 %v2838_v26, %v1724_v54  ;;  %v932_v10 = vmul.f32 %v2619_v7, %v2702_v15  ;;  %v1748_v39 = vadd.f32 %v2838_v26, %v1725_v63 }
 0x112   : > { %v975_v11 = vsel %vm972_vm5, %v973_v14, %v974_v58  ;;  %v977_v40 = vsel %vm972_vm5, %v974_v58, %v976_v57  ;;  %v1100_v13 = vsel %vm1097_vm6, %v1098_v4, %v1099_v59  ;;  %v983_v21 = vrot.slane %v930_v56, 1 }
 0x113   : > { %v1029_v20 = vadd.f32 %v975_v11, %v888_v12  ;;  %v1030_v41 = vadd.f32 %v977_v40, %v889_v48  ;;  %v1102_v22 = vsel %vm1097_vm6, %v1099_v59, %v1101_v0  ;;  %v1763_v23 = vmax.f32 %v1747_v1, 0.0 }
 0x114   : > { %v1764_v51 = vmax.f32 %v1748_v39, 0.0  ;;  %v984_v27 = vrot.slane %v931_v3, 1  ;;  %v986_v31 = vrot.slane %v932_v10, 1  ;;  %v1055_v14 = vmul.f32 %v2621_v8, %v2635_v24 }
 0x115   : > { %v1154_v33 = vadd.f32 %v1100_v13, %v1029_v20  ;;  %v1155_v36 = vadd.f32 %v1102_v22, %v1030_v41  ;;  %v2854_v42 = vmin.f32 %v1763_v23, 6.0  ;;  %v1056_v48 = vmul.f32 %v2621_v8, %v2667_v46 }
 0x116   : > { %v2858_v49 = vmin.f32 %v1764_v51, 6.0  ;;  %v985_v4 = vsel %vm972_vm5, %v983_v21, %v984_v27  ;;  %v987_v12 = vsel %vm972_vm5, %v984_v27, %v986_v31  ;;  %v1057_v24 = vmul.f32 %v2621_v8, %v2702_v15  ;;  %v2897_v51 = vld [vmem:[#allocation2 + $0x68] sm:$0xff] }
 0x117   : > { %v1190_v53 = vadd.f32 %v2665_v45, %v1154_v33  ;;  %v1191_v37 = vadd.f32 %v2695_v5, %v1155_v36  ;;  %v1033_v44 = vadd.f32 %v985_v4, %v892_v43  ;;  %v1034_v52 = vadd.f32 %v987_v12, %v893_v47 }
 0x118   : > { %v1800_v54 = vpack.c.bf16 %v2858_v49, %v2854_v42  ;;  %v1108_v56 = vrot.slane %v1055_v14, 2  ;;  %v1109_v58 = vrot.slane %v1056_v48, 2  ;;  %v1178_v46 = vmul.f32 %v2623_v9, %v2786_v2  ;;  %v2904_v48 = vld [vmem:[#allocation2 + $0x70] sm:$0x3] }
 0x119   : > { %v1314_v57 = vadd.f32 %v2712_v34, %v1190_v53  ;;  %v1315_v59 = vadd.f32 %v2715_v35, %v1191_v37  ;;  %v1179_v45 = vmul.f32 %v2623_v9, %v2788_v16  ;;  %v1111_v43 = vrot.slane %v1057_v24, 2 }
 0x11a   : > { %v1110_v5 = vsel %vm1097_vm6, %v1108_v56, %v1109_v58  ;;  %v1216_v47 = vmul.f32 %v2640_v29, %v2786_v2  ;;  %v1217_v15 = vmul.f32 %v2640_v29, %v2788_v16  ;;  %v1218_v0 = vmul.f32 %v2640_v29, %v2800_v32 }
 0x11b   : > { %v1438_v63 = vadd.f32 %v2722_v50, %v1314_v57  ;;  %v1439_v34 = vadd.f32 %v2729_v60, %v1315_v59  ;;  %v1158_v35 = vadd.f32 %v1110_v5, %v1033_v44  ;;  %v1112_v1 = vsel %vm1097_vm6, %v1109_v58, %v1111_v43  ;;  %v2890_v50 = vld [vmem:[#allocation2 + $0x60] sm:$0xff] }
 0x11c   : > { %v1268_v3 = vrot.slane %v1216_v47, 1  ;;  %v1269_v10 = vrot.slane %v1217_v15, 1  ;;  %v1340_v11 = vmul.f32 %v2642_v30, %v2786_v2  ;;  %v1159_v39 = vadd.f32 %v1112_v1, %v1034_v52 }
 0x11d   : > { %v1474_v40 = vadd.f32 %v2650_v38, %v1438_v63  ;;  %v1475_v13 = vadd.f32 %v2678_v55, %v1439_v34  ;;  %v1194_v20 = vadd.f32 %v1178_v46, %v1158_v35  ;;  %v1271_v41 = vrot.slane %v1218_v0, 1 }
 0x11e   : > { %v1270_v60 = vsel %vm972_vm5, %v1268_v3, %v1269_v10  ;;  %v1341_v22 = vmul.f32 %v2642_v30, %v2788_v16  ;;  %v1342_v23 = vmul.f32 %v2642_v30, %v2800_v32  ;;  %v1195_v55 = vadd.f32 %v1179_v45, %v1159_v39 }
 0x11f   : > { %v1598_v21 = vadd.f32 %v2734_v61, %v1474_v40  ;;  %v1599_v38 = vadd.f32 %v2737_v62, %v1475_v13  ;;  %v1318_v27 = vadd.f32 %v1270_v60, %v1194_v20  ;;  %v1272_v31 = vsel %vm972_vm5, %v1269_v10, %v1271_v41 }
 0x120   : > { %v1392_v33 = vrot.slane %v1340_v11, 2  ;;  %v1393_v36 = vrot.slane %v1341_v22, 2  ;;  %v1395_v14 = vrot.slane %v1342_v23, 2  ;;  %v1319_v53 = vadd.f32 %v1272_v31, %v1195_v55 }
 0x121   : > { %v1722_v4 = vadd.f32 %v2753_v25, %v1598_v21  ;;  %v1723_v12 = vadd.f32 %v2756_v28, %v1599_v38  ;;  %v1462_v37 = vmul.f32 %v2627_v17, %v2890_v50  ;;  %v1463_v44 = vmul.f32 %v2627_v17, %v2897_v51 }
 0x122   : > { %v1394_v61 = vsel %vm1097_vm6, %v1392_v33, %v1393_v36  ;;  %v1396_v62 = vsel %vm1097_vm6, %v1393_v36, %v1395_v14  ;;  %v1500_v52 = vmul.f32 %v2629_v18, %v2890_v50  ;;  %v1501_v58 = vmul.f32 %v2629_v18, %v2897_v51 }
 0x123   : > { %v1745_v25 = vadd.f32 %v2838_v26, %v1722_v4  ;;  %v1746_v28 = vadd.f32 %v2838_v26, %v1723_v12  ;;  %v1442_v24 = vadd.f32 %v1394_v61, %v1318_v27  ;;  %v1443_v56 = vadd.f32 %v1396_v62, %v1319_v53 }
 0x124   : > { %v1502_v57 = vmul.f32 %v2629_v18, %v2904_v48  ;;  %v1552_v59 = vrot.slane %v1500_v52, 1  ;;  %v1624_v46 = vmul.f32 %v2631_v19, %v2890_v50  ;;  %v1553_v15 = vrot.slane %v1501_v58, 1 }
 0x125   : > { %v1761_v45 = vmax.f32 %v1745_v25, 0.0  ;;  %v1762_v5 = vmax.f32 %v1746_v28, 0.0  ;;  %v1478_v43 = vadd.f32 %v1462_v37, %v1442_v24  ;;  %v1479_v47 = vadd.f32 %v1463_v44, %v1443_v56 }
 0x126   : > { %v1555_v63 = vrot.slane %v1502_v57, 1  ;;  %v1625_v34 = vmul.f32 %v2631_v19, %v2897_v51  ;;  %v1626_v35 = vmul.f32 %v2631_v19, %v2904_v48  ;;  %v1676_v3 = vrot.slane %v1624_v46, 2 }
 0x127   : > { %v1777_v0 = vmin.f32 %v1761_v45, 6.0  ;;  %v1778_v1 = vmin.f32 %v1762_v5, 6.0  ;;  %v894_v10 = vmul.f32 %v2617_v6, %v2786_v2  ;;  %v1554_v11 = vsel %vm972_vm5, %v1552_v59, %v1553_v15  ;;  %v2963_v5 = vld [vmem:[#allocation2 + $0x78] sm:$0xff] }
 0x128   : > { %v1556_v40 = vsel %vm972_vm5, %v1553_v15, %v1555_v63  ;;  %v1677_v13 = vrot.slane %v1625_v34, 2  ;;  %v1679_v39 = vrot.slane %v1626_v35, 2  ;;  %v1602_v60 = vadd.f32 %v1554_v11, %v1478_v43  ;;  %v2965_v43 = vld [vmem:[#allocation2 + $0x80] sm:$0xff] }
 0x129   : > { %v1799_v20 = vpack.c.bf16 %v1778_v1, %v1777_v0  ;;  %v1603_v41 = vadd.f32 %v1556_v40, %v1479_v47  ;;  %v895_v22 = vmul.f32 %v2617_v6, %v2788_v16  ;;  %v933_v38 = vmul.f32 %v2619_v7, %v2786_v2 }
 0x12a   : > { %v1678_v23 = vsel %vm1097_vm6, %v1676_v3, %v1677_v13  ;;  %v1680_v21 = vsel %vm1097_vm6, %v1677_v13, %v1679_v39  ;;  %v934_v55 = vmul.f32 %v2619_v7, %v2788_v16  ;;  %v935_v33 = vmul.f32 %v2619_v7, %v2800_v32  ;;  %v2978_v39 = vld [vmem:[#allocation2 + $0x88] sm:$0x3] }
 0x12b   : > { %2264 = vmatprep.mubr.msk.bf16.mxu1 %vm828_vm4, %v1799_v20  ;;  %v1726_v27 = vadd.f32 %v1678_v23, %v1602_v60  ;;  %v1727_v31 = vadd.f32 %v1680_v21, %v1603_v41  ;;  %v1058_v36 = vmul.f32 %v2621_v8, %v2786_v2  ;;  %v988_v14 = vrot.slane %v933_v38, 1 }
 0x12c   : > { %2265 = vmatmul.mubr.msk.bf16.vlgmr.msra.gmra.mxu1 %vm828_vm4, %v1800_v54  ;;  %v989_v4 = vrot.slane %v934_v55, 1  ;;  %v1059_v12 = vmul.f32 %v2621_v8, %v2788_v16  ;;  %v1060_v53 = vmul.f32 %v2621_v8, %v2800_v32  ;;  %v991_v62 = vrot.slane %v935_v33, 1 }
 0x12d   : > { %v1749_v37 = vadd.f32 %v2838_v26, %v1726_v27  ;;  %v1750_v61 = vadd.f32 %v2838_v26, %v1727_v31  ;;  %v1113_v44 = vrot.slane %v1058_v36, 2  ;;  %v1180_v49 = vmul.f32 %v2623_v9, %v2890_v50 }
 0x12e   : > { %v990_v2 = vsel %vm972_vm5, %v988_v14, %v989_v4  ;;  %v1114_v52 = vrot.slane %v1059_v12, 2  ;;  %v1116_v42 = vrot.slane %v1060_v53, 2  ;;  %v992_v16 = vsel %vm972_vm5, %v989_v4, %v991_v62 }
 0x12f   : > { %v1765_v54 = vmax.f32 %v1749_v37, 0.0  ;;  %v1766_v25 = vmax.f32 %v1750_v61, 0.0  ;;  %v1035_v28 = vadd.f32 %v990_v2, %v894_v10  ;;  %v1036_v24 = vadd.f32 %v992_v16, %v895_v22 }
 0x130   : > { %v1115_v32 = vsel %vm1097_vm6, %v1113_v44, %v1114_v52  ;;  %v1117_v56 = vsel %vm1097_vm6, %v1114_v52, %v1116_v42  ;;  %v1181_v58 = vmul.f32 %v2623_v9, %v2897_v51  ;;  %v1219_v45 = vmul.f32 %v2640_v29, %v2890_v50 }
 0x131   : > { %v1781_v57 = vmin.f32 %v1765_v54, 6.0  ;;  %v1782_v59 = vmin.f32 %v1766_v25, 6.0  ;;  %v1160_v46 = vadd.f32 %v1115_v32, %v1035_v28  ;;  %v1161_v47 = vadd.f32 %v1117_v56, %v1036_v24 }
 0x132   : > { %v1220_v15 = vmul.f32 %v2640_v29, %v2897_v51  ;;  %v1221_v63 = vmul.f32 %v2640_v29, %v2904_v48  ;;  %v1343_v34 = vmul.f32 %v2642_v30, %v2890_v50  ;;  %v1273_v1 = vrot.slane %v1219_v45, 1 }
 0x133   : > { %v1801_v35 = vpack.c.bf16 %v1782_v59, %v1781_v57  ;;  %v1196_v0 = vadd.f32 %v1180_v49, %v1160_v46  ;;  %v1344_v3 = vmul.f32 %v2642_v30, %v2897_v51  ;;  %v1197_v10 = vadd.f32 %v1181_v58, %v1161_v47 }
 0x134   : > { %v1274_v11 = vrot.slane %v1220_v15, 1  ;;  %v1276_v40 = vrot.slane %v1221_v63, 1  ;;  %v1345_v13 = vmul.f32 %v2642_v30, %v2904_v48  ;;  %v1397_v20 = vrot.slane %v1343_v34, 2 }
 0x135   : > { %2268 = vmatprep.mubr.msk.bf16.mxu1 %vm828_vm4, %v1801_v35  ;;  %v1398_v60 = vrot.slane %v1344_v3, 2  ;;  %v1464_v41 = vmul.f32 %v2627_v17, %v2963_v5  ;;  %v1465_v22 = vmul.f32 %v2627_v17, %v2965_v43  ;;  %v1503_v55 = vmul.f32 %v2629_v18, %v2963_v5 }
 0x136   : > { %v1275_v23 = vsel %vm972_vm5, %v1273_v1, %v1274_v11  ;;  %v1277_v21 = vsel %vm972_vm5, %v1274_v11, %v1276_v40  ;;  %v1400_v38 = vrot.slane %v1345_v13, 2  ;;  %v1504_v36 = vmul.f32 %v2629_v18, %v2965_v43 }
 0x137   : > { %v1320_v27 = vadd.f32 %v1275_v23, %v1196_v0  ;;  %v1321_v31 = vadd.f32 %v1277_v21, %v1197_v10  ;;  %v1399_v33 = vsel %vm1097_vm6, %v1397_v20, %v1398_v60  ;;  %v1505_v4 = vmul.f32 %v2629_v18, %v2978_v39 }
 0x138   : > { %v1401_v14 = vsel %vm1097_vm6, %v1398_v60, %v1400_v38  ;;  %v1557_v12 = vrot.slane %v1503_v55, 1  ;;  %v1627_v53 = vmul.f32 %v2631_v19, %v2963_v5  ;;  %v1558_v62 = vrot.slane %v1504_v36, 1 }
 0x139   : > { %v1444_v37 = vadd.f32 %v1399_v33, %v1320_v27  ;;  %v1445_v61 = vadd.f32 %v1401_v14, %v1321_v31  ;;  %v1628_v44 = vmul.f32 %v2631_v19, %v2965_v43  ;;  %v1560_v2 = vrot.slane %v1505_v4, 1  ;;  %v3034_v4 = vld [vmem:[#allocation2 + $0x90] sm:$0xff] }
 0x13a   : > { %v1629_v52 = vmul.f32 %v2631_v19, %v2978_v39  ;;  %v1681_v42 = vrot.slane %v1627_v53, 2  ;;  %v896_v49 = vmul.f32 %v2617_v6, %v2890_v50  ;;  %v1559_v16 = vsel %vm972_vm5, %v1557_v12, %v1558_v62 }
 0x13b   : > { %v1480_v54 = vadd.f32 %v1464_v41, %v1444_v37  ;;  %v1481_v25 = vadd.f32 %v1465_v22, %v1445_v61  ;;  %v1682_v28 = vrot.slane %v1628_v44, 2  ;;  %v1561_v24 = vsel %vm972_vm5, %v1558_v62, %v1560_v2  ;;  %v3038_v62 = vld [vmem:[#allocation2 + $0x98] sm:$0xff] }
 0x13c   : > { %v1684_v32 = vrot.slane %v1629_v52, 2  ;;  %v897_v56 = vmul.f32 %v2617_v6, %v2897_v51  ;;  %v936_v58 = vmul.f32 %v2619_v7, %v2890_v50  ;;  %v937_v45 = vmul.f32 %v2619_v7, %v2897_v51 }
 0x13d   : > { %v1604_v57 = vadd.f32 %v1559_v16, %v1480_v54  ;;  %v1605_v59 = vadd.f32 %v1561_v24, %v1481_v25  ;;  %v1683_v46 = vsel %vm1097_vm6, %v1681_v42, %v1682_v28  ;;  %v938_v15 = vmul.f32 %v2619_v7, %v2904_v48 }
 0x13e   : > { %v1685_v47 = vsel %vm1097_vm6, %v1682_v28, %v1684_v32  ;;  %v993_v63 = vrot.slane %v936_v58, 1  ;;  %v1061_v34 = vmul.f32 %v2621_v8, %v2890_v50  ;;  %v994_v1 = vrot.slane %v937_v45, 1  ;;  %v3044_v28 = vld [vmem:[#allocation2 + $0xa0] sm:$0x3] }
 0x13f   : > { %v1728_v35 = vadd.f32 %v1683_v46, %v1604_v57  ;;  %v1729_v0 = vadd.f32 %v1685_v47, %v1605_v59  ;;  %v1062_v3 = vmul.f32 %v2621_v8, %v2897_v51  ;;  %v996_v10 = vrot.slane %v938_v15, 1 }
 0x140   : > { %v1063_v11 = vmul.f32 %v2621_v8, %v2904_v48  ;;  %v1118_v40 = vrot.slane %v1061_v34, 2  ;;  %v1182_v13 = vmul.f32 %v2623_v9, %v2963_v5  ;;  %v995_v50 = vsel %vm972_vm5, %v993_v63, %v994_v1 }
 0x141   : > { %v1751_v20 = vadd.f32 %v2838_v26, %v1728_v35  ;;  %v1752_v60 = vadd.f32 %v2838_v26, %v1729_v0  ;;  %v1119_v41 = vrot.slane %v1062_v3, 2  ;;  %v997_v22 = vsel %vm972_vm5, %v994_v1, %v996_v10 }
 0x142   : > { %v1037_v23 = vadd.f32 %v995_v50, %v896_v49  ;;  %v1121_v21 = vrot.slane %v1063_v11, 2  ;;  %v1183_v51 = vmul.f32 %v2623_v9, %v2965_v43  ;;  %v1038_v55 = vadd.f32 %v997_v22, %v897_v56 }
 0x143   : > { %v1767_v38 = vmax.f32 %v1751_v20, 0.0  ;;  %v1768_v48 = vmax.f32 %v1752_v60, 0.0  ;;  %v1120_v27 = vsel %vm1097_vm6, %v1118_v40, %v1119_v41  ;;  %v1222_v36 = vmul.f32 %v2640_v29, %v2963_v5 }
 0x144   : > { %v1122_v31 = vsel %vm1097_vm6, %v1119_v41, %v1121_v21  ;;  %v1162_v33 = vadd.f32 %v1120_v27, %v1037_v23  ;;  %v1223_v14 = vmul.f32 %v2640_v29, %v2965_v43  ;;  %v1224_v61 = vmul.f32 %v2640_v29, %v2978_v39 }
 0x145   : > { %v1783_v12 = vmin.f32 %v1767_v38, 6.0  ;;  %v1784_v53 = vmin.f32 %v1768_v48, 6.0  ;;  %v1163_v37 = vadd.f32 %v1122_v31, %v1038_v55  ;;  %v1278_v2 = vrot.slane %v1222_v36, 1 }
 0x146   : > { %v1198_v44 = vadd.f32 %v1182_v13, %v1162_v33  ;;  %v1279_v52 = vrot.slane %v1223_v14, 1  ;;  %v1346_v42 = vmul.f32 %v2642_v30, %v2963_v5  ;;  %v1281_v25 = vrot.slane %v1224_v61, 1 }
 0x147   : > { %v1802_v49 = vpack.c.bf16 %v1784_v53, %v1783_v12  ;;  %v1199_v54 = vadd.f32 %v1183_v51, %v1163_v37  ;;  %v1347_v16 = vmul.f32 %v2642_v30, %v2965_v43  ;;  %v1348_v32 = vmul.f32 %v2642_v30, %v2978_v39 }
 0x148   : > { %v1280_v24 = vsel %vm972_vm5, %v1278_v2, %v1279_v52  ;;  %v1402_v56 = vrot.slane %v1346_v42, 2  ;;  %v1466_v58 = vmul.f32 %v2627_v17, %v3034_v4  ;;  %v1282_v57 = vsel %vm972_vm5, %v1279_v52, %v1281_v25 }
 0x149   : > { %2269 = vmatmul.mubr.msk.bf16.gmra.mxu1 %vm828_vm4, %v1802_v49  ;;  %v1322_v59 = vadd.f32 %v1280_v24, %v1198_v44  ;;  %v1403_v46 = vrot.slane %v1347_v16, 2  ;;  %v1467_v45 = vmul.f32 %v2627_v17, %v3038_v62  ;;  %v1323_v47 = vadd.f32 %v1282_v57, %v1199_v54 }
 0x14a   : > { %v1405_v15 = vrot.slane %v1348_v32, 2  ;;  %v1506_v63 = vmul.f32 %v2629_v18, %v3034_v4  ;;  %v1507_v34 = vmul.f32 %v2629_v18, %v3038_v62  ;;  %v1508_v0 = vmul.f32 %v2629_v18, %v3044_v28 }
 0x14b   : > { %v1404_v35 = vsel %vm1097_vm6, %v1402_v56, %v1403_v46  ;;  %v1630_v1 = vmul.f32 %v2631_v19, %v3034_v4  ;;  %v1631_v3 = vmul.f32 %v2631_v19, %v3038_v62  ;;  %v1632_v50 = vmul.f32 %v2631_v19, %v3044_v28 }
 0x14c   : > { %v1406_v10 = vsel %vm1097_vm6, %v1403_v46, %v1405_v15  ;;  %v1446_v11 = vadd.f32 %v1404_v35, %v1322_v59  ;;  %v1562_v40 = vrot.slane %v1506_v63, 1  ;;  %v1563_v13 = vrot.slane %v1507_v34, 1 }
 0x14d   : > { %v1447_v20 = vadd.f32 %v1406_v10, %v1323_v47  ;;  %v1565_v60 = vrot.slane %v1508_v0, 1  ;;  %v1686_v41 = vrot.slane %v1630_v1, 2  ;;  %v1687_v21 = vrot.slane %v1631_v3, 2  ;;  %v3101_v0 = vld [vmem:[#allocation2 + $0xa8] sm:$0xff] }
 0x14e   : > { %v1482_v22 = vadd.f32 %v1466_v58, %v1446_v11  ;;  %v1564_v23 = vsel %vm972_vm5, %v1562_v40, %v1563_v13  ;;  %v898_v51 = vmul.f32 %v2617_v6, %v2963_v5  ;;  %v1689_v55 = vrot.slane %v1632_v50, 2  ;;  %v3107_v40 = vld [vmem:[#allocation2 + $0xb0] sm:$0xff] }
 0x14f   : > { %v1483_v38 = vadd.f32 %v1467_v45, %v1447_v20  ;;  %v1566_v48 = vsel %vm972_vm5, %v1563_v13, %v1565_v60  ;;  %v899_v27 = vmul.f32 %v2617_v6, %v2965_v43  ;;  %v1688_v33 = vsel %vm1097_vm6, %v1686_v41, %v1687_v21 }
 0x150   : > { %v1606_v31 = vadd.f32 %v1564_v23, %v1482_v22  ;;  %v939_v36 = vmul.f32 %v2619_v7, %v2963_v5  ;;  %v940_v14 = vmul.f32 %v2619_v7, %v2965_v43  ;;  %v1690_v53 = vsel %vm1097_vm6, %v1687_v21, %v1689_v55 }
 0x151   : > { %v1607_v12 = vadd.f32 %v1566_v48, %v1483_v38  ;;  %v941_v37 = vmul.f32 %v2619_v7, %v2978_v39  ;;  %v1064_v61 = vmul.f32 %v2621_v8, %v2963_v5  ;;  %v1065_v42 = vmul.f32 %v2621_v8, %v2965_v43  ;;  %v3113_v38 = vld [vmem:[#allocation2 + $0xb8] sm:$0x3] }
 0x152   : > { %v1730_v44 = vadd.f32 %v1688_v33, %v1606_v31  ;;  %v998_v2 = vrot.slane %v939_v36, 1  ;;  %v999_v52 = vrot.slane %v940_v14, 1  ;;  %v1066_v25 = vmul.f32 %v2621_v8, %v2978_v39 }
 0x153   : > { %v1731_v49 = vadd.f32 %v1690_v53, %v1607_v12  ;;  %v1001_v54 = vrot.slane %v941_v37, 1  ;;  %v1123_v16 = vrot.slane %v1064_v61, 2  ;;  %v1124_v56 = vrot.slane %v1065_v42, 2 }
 0x154   : > { %v1753_v24 = vadd.f32 %v2838_v26, %v1730_v44  ;;  %v1000_v32 = vsel %vm972_vm5, %v998_v2, %v999_v52  ;;  %v1184_v5 = vmul.f32 %v2623_v9, %v3034_v4  ;;  %v1126_v43 = vrot.slane %v1066_v25, 2 }
 0x155   : > { %v1754_v58 = vadd.f32 %v2838_v26, %v1731_v49  ;;  %v1002_v57 = vsel %vm972_vm5, %v999_v52, %v1001_v54  ;;  %v1039_v59 = vadd.f32 %v1000_v32, %v898_v51  ;;  %v1125_v47 = vsel %vm1097_vm6, %v1123_v16, %v1124_v56 }
 0x156   : > { %v1769_v46 = vmax.f32 %v1753_v24, 0.0  ;;  %v1040_v45 = vadd.f32 %v1002_v57, %v899_v27  ;;  %v1185_v39 = vmul.f32 %v2623_v9, %v3038_v62  ;;  %v1127_v63 = vsel %vm1097_vm6, %v1124_v56, %v1126_v43 }
 0x157   : > { %v1770_v15 = vmax.f32 %v1754_v58, 0.0  ;;  %v1164_v34 = vadd.f32 %v1125_v47, %v1039_v59  ;;  %v1225_v35 = vmul.f32 %v2640_v29, %v3034_v4  ;;  %v1226_v10 = vmul.f32 %v2640_v29, %v3038_v62 }
 0x158   : > { %v1785_v1 = vmin.f32 %v1769_v46, 6.0  ;;  %v1165_v3 = vadd.f32 %v1127_v63, %v1040_v45  ;;  %v1227_v11 = vmul.f32 %v2640_v29, %v3044_v28  ;;  %v1349_v50 = vmul.f32 %v2642_v30, %v3034_v4 }
 0x159   : > { %v1786_v13 = vmin.f32 %v1770_v15, 6.0  ;;  %v1200_v20 = vadd.f32 %v1184_v5, %v1164_v34  ;;  %v1283_v60 = vrot.slane %v1225_v35, 1  ;;  %v1284_v22 = vrot.slane %v1226_v10, 1 }
 0x15a   : > { %v1201_v41 = vadd.f32 %v1185_v39, %v1165_v3  ;;  %v1286_v23 = vrot.slane %v1227_v11, 1  ;;  %v1350_v21 = vmul.f32 %v2642_v30, %v3038_v62  ;;  %v1351_v48 = vmul.f32 %v2642_v30, %v3044_v28 }
 0x15b   : > { %v1803_v51 = vpack.c.bf16 %v1786_v13, %v1785_v1  ;;  %v1407_v55 = vrot.slane %v1349_v50, 2  ;;  %v1468_v27 = vmul.f32 %v2627_v17, %v3101_v0  ;;  %v1285_v31 = vsel %vm972_vm5, %v1283_v60, %v1284_v22 }
 0x15c   : > { %v1287_v33 = vsel %vm972_vm5, %v1284_v22, %v1286_v23  ;;  %v1408_v36 = vrot.slane %v1350_v21, 2  ;;  %v1469_v14 = vmul.f32 %v2627_v17, %v3107_v40  ;;  %v1324_v12 = vadd.f32 %v1285_v31, %v1200_v20 }
 0x15d   : > { %2272 = vmatprep.mubr.msk.bf16.mxu1 %vm828_vm4, %v1803_v51  ;;  %v1325_v53 = vadd.f32 %v1287_v33, %v1201_v41  ;;  %v1410_v37 = vrot.slane %v1351_v48, 2  ;;  %v1509_v61 = vmul.f32 %v2629_v18, %v3101_v0  ;;  %v1510_v2 = vmul.f32 %v2629_v18, %v3107_v40 }
 0x15e   : > { %v1409_v44 = vsel %vm1097_vm6, %v1407_v55, %v1408_v36  ;;  %v1511_v52 = vmul.f32 %v2629_v18, %v3113_v38  ;;  %v1633_v42 = vmul.f32 %v2631_v19, %v3101_v0  ;;  %v1634_v16 = vmul.f32 %v2631_v19, %v3107_v40 }
 0x15f   : > { %v1411_v49 = vsel %vm1097_vm6, %v1408_v36, %v1410_v37  ;;  %v1448_v54 = vadd.f32 %v1409_v44, %v1324_v12  ;;  %v1567_v25 = vrot.slane %v1509_v61, 1  ;;  %v1568_v32 = vrot.slane %v1510_v2, 1 }
 0x160   : > { %v1449_v24 = vadd.f32 %v1411_v49, %v1325_v53  ;;  %v1570_v56 = vrot.slane %v1511_v52, 1  ;;  %v1635_v5 = vmul.f32 %v2631_v19, %v3113_v38  ;;  %v1691_v57 = vrot.slane %v1633_v42, 2 }
 0x161   : > { %v1484_v58 = vadd.f32 %v1468_v27, %v1448_v54  ;;  %v1692_v59 = vrot.slane %v1634_v16, 2  ;;  %v900_v43 = vmul.f32 %v2617_v6, %v3034_v4  ;;  %v1569_v45 = vsel %vm972_vm5, %v1567_v25, %v1568_v32  ;;  %v3172_v25 = vld [vmem:[#allocation2 + $0xc0] sm:$0xff]  ;;  %v3174_v16 = vld [vmem:[#allocation2 + $0xc8] sm:$0xff] }
 0x162   : > { %v1485_v46 = vadd.f32 %v1469_v14, %v1449_v24  ;;  %v1571_v47 = vsel %vm972_vm5, %v1568_v32, %v1570_v56  ;;  %v1694_v39 = vrot.slane %v1635_v5, 2  ;;  %v901_v34 = vmul.f32 %v2617_v6, %v3038_v62 }
 0x163   : > { %v1608_v15 = vadd.f32 %v1569_v45, %v1484_v58  ;;  %v1693_v63 = vsel %vm1097_vm6, %v1691_v57, %v1692_v59  ;;  %v942_v35 = vmul.f32 %v2619_v7, %v3034_v4  ;;  %v943_v10 = vmul.f32 %v2619_v7, %v3038_v62 }
 0x164   : > { %v1609_v1 = vadd.f32 %v1571_v47, %v1485_v46  ;;  %v1695_v3 = vsel %vm1097_vm6, %v1692_v59, %v1694_v39  ;;  %v944_v11 = vmul.f32 %v2619_v7, %v3044_v28  ;;  %v1067_v60 = vmul.f32 %v2621_v8, %v3034_v4  ;;  %v3182_v46 = vld [vmem:[#allocation2 + $0xd0] sm:$0x3] }
 0x165   : > { %v1732_v13 = vadd.f32 %v1693_v63, %v1608_v15  ;;  %v1003_v20 = vrot.slane %v942_v35, 1  ;;  %v1068_v50 = vmul.f32 %v2621_v8, %v3038_v62  ;;  %v1004_v22 = vrot.slane %v943_v10, 1 }
 0x166   : > { %v1733_v41 = vadd.f32 %v1695_v3, %v1609_v1  ;;  %v1006_v23 = vrot.slane %v944_v11, 1  ;;  %v1069_v21 = vmul.f32 %v2621_v8, %v3044_v28  ;;  %v1128_v48 = vrot.slane %v1067_v60, 2 }
 0x167   : > { %v1755_v51 = vadd.f32 %v2838_v26, %v1732_v13  ;;  %v1129_v55 = vrot.slane %v1068_v50, 2  ;;  %v1186_v27 = vmul.f32 %v2623_v9, %v3101_v0  ;;  %v1005_v4 = vsel %vm972_vm5, %v1003_v20, %v1004_v22 }
 0x168   : > { %v1756_v31 = vadd.f32 %v2838_v26, %v1733_v41  ;;  %v1007_v33 = vsel %vm972_vm5, %v1004_v22, %v1006_v23  ;;  %v1131_v62 = vrot.slane %v1069_v21, 2  ;;  %v1041_v14 = vadd.f32 %v1005_v4, %v900_v43 }
 0x169   : > { %v1771_v36 = vmax.f32 %v1755_v51, 0.0  ;;  %v1042_v12 = vadd.f32 %v1007_v33, %v901_v34  ;;  %v1130_v53 = vsel %vm1097_vm6, %v1128_v48, %v1129_v55  ;;  %v1187_v61 = vmul.f32 %v2623_v9, %v3107_v40 }
 0x16a   : > { %v1772_v28 = vmax.f32 %v1756_v31, 0.0  ;;  %v1132_v37 = vsel %vm1097_vm6, %v1129_v55, %v1131_v62  ;;  %v1228_v44 = vmul.f32 %v2640_v29, %v3101_v0  ;;  %v1166_v52 = vadd.f32 %v1130_v53, %v1041_v14 }
 0x16b   : > { %v1787_v2 = vmin.f32 %v1771_v36, 6.0  ;;  %v1167_v42 = vadd.f32 %v1132_v37, %v1042_v12  ;;  %v1229_v49 = vmul.f32 %v2640_v29, %v3107_v40  ;;  %v1230_v24 = vmul.f32 %v2640_v29, %v3113_v38 }
 0x16c   : > { %v1788_v54 = vmin.f32 %v1772_v28, 6.0  ;;  %v1288_v32 = vrot.slane %v1228_v44, 1  ;;  %v1352_v56 = vmul.f32 %v2642_v30, %v3101_v0  ;;  %v1202_v5 = vadd.f32 %v1186_v27, %v1166_v52 }
 0x16d   : > { %v1203_v58 = vadd.f32 %v1187_v61, %v1167_v42  ;;  %v1289_v57 = vrot.slane %v1229_v49, 1  ;;  %v1353_v59 = vmul.f32 %v2642_v30, %v3107_v40  ;;  %v1291_v45 = vrot.slane %v1230_v24, 1 }
 0x16e   : > { %v1804_v43 = vpack.c.bf16 %v1788_v54, %v1787_v2  ;;  %v1354_v47 = vmul.f32 %v2642_v30, %v3113_v38  ;;  %v1412_v39 = vrot.slane %v1352_v56, 2  ;;  %v1470_v34 = vmul.f32 %v2627_v17, %v3172_v25 }
 0x16f   : > { %v1290_v15 = vsel %vm972_vm5, %v1288_v32, %v1289_v57  ;;  %v1413_v63 = vrot.slane %v1353_v59, 2  ;;  %v1471_v35 = vmul.f32 %v2627_v17, %v3174_v16  ;;  %v1292_v1 = vsel %vm972_vm5, %v1289_v57, %v1291_v45 }
 0x170   : > { %2273 = vmatmul.mubr.msk.bf16.gmra.mxu1 %vm828_vm4, %v1804_v43  ;;  %v1326_v3 = vadd.f32 %v1290_v15, %v1202_v5  ;;  %v1415_v10 = vrot.slane %v1354_v47, 2  ;;  %v1512_v11 = vmul.f32 %v2629_v18, %v3172_v25  ;;  %v1327_v13 = vadd.f32 %v1292_v1, %v1203_v58 }
 0x171   : > { %v1414_v20 = vsel %vm1097_vm6, %v1412_v39, %v1413_v63  ;;  %v1513_v60 = vmul.f32 %v2629_v18, %v3174_v16  ;;  %v1514_v50 = vmul.f32 %v2629_v18, %v3182_v46  ;;  %v1636_v21 = vmul.f32 %v2631_v19, %v3172_v25 }
 0x172   : > { %v1416_v41 = vsel %vm1097_vm6, %v1413_v63, %v1415_v10  ;;  %v1450_v22 = vadd.f32 %v1414_v20, %v1326_v3  ;;  %v1572_v23 = vrot.slane %v1512_v11, 1  ;;  %v1637_v27 = vmul.f32 %v2631_v19, %v3174_v16 }
 0x173   : > { %v1451_v51 = vadd.f32 %v1416_v41, %v1327_v13  ;;  %v1573_v48 = vrot.slane %v1513_v60, 1  ;;  %v1575_v55 = vrot.slane %v1514_v50, 1  ;;  %v1638_v4 = vmul.f32 %v2631_v19, %v3182_v46  ;;  %v878_v60 = vld [vmem:[#allocation2 + $0xd8] sm:$0xff] }
 0x174   : > { %v1486_v31 = vadd.f32 %v1470_v34, %v1450_v22  ;;  %v1696_v33 = vrot.slane %v1636_v21, 2  ;;  %v902_v62 = vmul.f32 %v2617_v6, %v3101_v0  ;;  %v1697_v53 = vrot.slane %v1637_v27, 2 }
 0x175   : > { %v1487_v36 = vadd.f32 %v1471_v35, %v1451_v51  ;;  %v1574_v14 = vsel %vm972_vm5, %v1572_v23, %v1573_v48  ;;  %v1576_v12 = vsel %vm972_vm5, %v1573_v48, %v1575_v55  ;;  %v1699_v37 = vrot.slane %v1638_v4, 2  ;;  %v879_v23 = vld [vmem:[#allocation2 + $0xe0] sm:$0xff] }
 0x176   : > { %v1610_v28 = vadd.f32 %v1574_v14, %v1486_v31  ;;  %v903_v61 = vmul.f32 %v2617_v6, %v3107_v40  ;;  %v945_v44 = vmul.f32 %v2619_v7, %v3101_v0  ;;  %v1698_v52 = vsel %vm1097_vm6, %v1696_v33, %v1697_v53  ;;  %v880_v33 = vld [vmem:[#allocation2 + $0xe8] sm:$0x3] }
 0x177   : > { %v1611_v2 = vadd.f32 %v1576_v12, %v1487_v36  ;;  %v946_v42 = vmul.f32 %v2619_v7, %v3107_v40  ;;  %v947_v49 = vmul.f32 %v2619_v7, %v3113_v38  ;;  %v1700_v54 = vsel %vm1097_vm6, %v1697_v53, %v1699_v37 }
 0x178   : > { %v1734_v24 = vadd.f32 %v1698_v52, %v1610_v28  ;;  %v1008_v32 = vrot.slane %v945_v44, 1  ;;  %v1070_v56 = vmul.f32 %v2621_v8, %v3101_v0  ;;  %v1071_v57 = vmul.f32 %v2621_v8, %v3107_v40 }
 0x179   : > { %v1735_v6 = vadd.f32 %v1700_v54, %v1611_v2  ;;  %v1009_v5 = vrot.slane %v946_v42, 1  ;;  %v1011_v58 = vrot.slane %v947_v49, 1  ;;  %v1072_v43 = vmul.f32 %v2621_v8, %v3113_v38 }
 0x17a   : > { %v1757_v59 = vadd.f32 %v2838_v26, %v1734_v24  ;;  %v1133_v45 = vrot.slane %v1070_v56, 2  ;;  %v1188_v7 = vmul.f32 %v2623_v9, %v3172_v25  ;;  %v1134_v15 = vrot.slane %v1071_v57, 2 }
 0x17b   : > { %v1758_v47 = vadd.f32 %v2838_v26, %v1735_v6  ;;  %v1010_v39 = vsel %vm972_vm5, %v1008_v32, %v1009_v5  ;;  %v1012_v0 = vsel %vm972_vm5, %v1009_v5, %v1011_v58  ;;  %v1136_v40 = vrot.slane %v1072_v43, 2 }
 0x17c   : > { %v1773_v63 = vmax.f32 %v1757_v59, 0.0  ;;  %v1043_v34 = vadd.f32 %v1010_v39, %v902_v62  ;;  %v1044_v35 = vadd.f32 %v1012_v0, %v903_v61  ;;  %v1135_v3 = vsel %vm1097_vm6, %v1133_v45, %v1134_v15 }
 0x17d   : > { %v1774_v1 = vmax.f32 %v1758_v47, 0.0  ;;  %v1189_v8 = vmul.f32 %v2623_v9, %v3174_v16  ;;  %v1231_v38 = vmul.f32 %v2640_v29, %v3172_v25  ;;  %v1137_v26 = vsel %vm1097_vm6, %v1134_v15, %v1136_v40 }
 0x17e   : > { %v1789_v10 = vmin.f32 %v1773_v63, 6.0  ;;  %v1168_v11 = vadd.f32 %v1135_v3, %v1043_v34  ;;  %v1232_v13 = vmul.f32 %v2640_v29, %v3174_v16  ;;  %v1169_v50 = vadd.f32 %v1137_v26, %v1044_v35 }
 0x17f   : > { %v1790_v20 = vmin.f32 %v1774_v1, 6.0  ;;  %v1233_v41 = vmul.f32 %v2640_v29, %v3182_v46  ;;  %v1293_v22 = vrot.slane %v1231_v38, 1  ;;  %v1355_v51 = vmul.f32 %v2642_v30, %v3172_v25 }
 0x180   : > { %v1204_v21 = vadd.f32 %v1188_v7, %v1168_v11  ;;  %v1294_v9 = vrot.slane %v1232_v13, 1  ;;  %v1356_v48 = vmul.f32 %v2642_v30, %v3174_v16  ;;  %v1205_v27 = vadd.f32 %v1189_v8, %v1169_v50  ;;  %v3273_v8 = vld [vmem:[%s3369_s8] ss:$0 sm:$0xff] }
 0x181   : > { %v1805_v55 = vpack.c.bf16 %v1790_v20, %v1789_v10  ;;  %v1296_v31 = vrot.slane %v1233_v41, 1  ;;  %v1357_v4 = vmul.f32 %v2642_v30, %v3182_v46  ;;  %v1417_v29 = vrot.slane %v1355_v51, 2 }
 0x182   : > { %v1295_v62 = vsel %vm972_vm5, %v1293_v22, %v1294_v9  ;;  %v1418_v36 = vrot.slane %v1356_v48, 2  ;;  %v1472_v14 = vmul.f32 %v2627_v17, %v878_v60  ;;  %v1473_v16 = vmul.f32 %v2627_v17, %v879_v23 }
 0x183   : > { %2276 = vmatprep.mubr.msk.bf16.mxu1 %vm828_vm4, %v1805_v55  ;;  %v1297_v25 = vsel %vm972_vm5, %v1294_v9, %v1296_v31  ;;  %v1328_v12 = vadd.f32 %v1295_v62, %v1204_v21  ;;  %v1420_v53 = vrot.slane %v1357_v4, 2  ;;  %v1515_v30 = vmul.f32 %v2629_v18, %v878_v60  ;;  %v2325_v55 = vld [vmem:[%s2492_s28] sm:$0xff] }
 0x184   : > { %v1329_v28 = vadd.f32 %v1297_v25, %v1205_v27  ;;  %v1419_v37 = vsel %vm1097_vm6, %v1417_v29, %v1418_v36  ;;  %v1516_v46 = vmul.f32 %v2629_v18, %v879_v23  ;;  %v1517_v2 = vmul.f32 %v2629_v18, %v880_v33 }
 0x185   : > { %v1421_v61 = vsel %vm1097_vm6, %v1418_v36, %v1420_v53  ;;  %v1452_v44 = vadd.f32 %v1419_v37, %v1328_v12  ;;  %v1639_v52 = vmul.f32 %v2631_v19, %v878_v60  ;;  %v1577_v49 = vrot.slane %v1515_v30, 1  ;;  %v2327_v36 = vld [vmem:[%s2492_s28 + $0x8] sm:$0xff] }
 0x186   : > { %v1453_v42 = vadd.f32 %v1421_v61, %v1329_v28  ;;  %v1578_v54 = vrot.slane %v1516_v46, 1  ;;  %v1640_v24 = vmul.f32 %v2631_v19, %v879_v23  ;;  %v1580_v32 = vrot.slane %v1517_v2, 1  ;;  %v2324_v23 = vld [vmem:[%s2492_s28 + $0x10] sm:$0xff] }
 0x187   : > { %v1488_v17 = vadd.f32 %v1472_v14, %v1452_v44  ;;  %v1641_v56 = vmul.f32 %v2631_v19, %v880_v33  ;;  %v1701_v6 = vrot.slane %v1639_v52, 2  ;;  %v2323_v19 = vld [vmem:[%s3367_s6] ss:$0 sm:$0xff]  ;;  %v2326_v33 = vld [vmem:[%s2492_s28 + $0x18] sm:$0xff]  ;;  %v2328_v2 = vld [vmem:[%s2492_s28 + $0x30] sm:$0xff] }
 0x188   : > { %v1489_v5 = vadd.f32 %v1473_v16, %v1453_v42  ;;  %v1579_v58 = vsel %vm972_vm5, %v1577_v49, %v1578_v54  ;;  %v1702_v57 = vrot.slane %v1640_v24, 2  ;;  %v1581_v59 = vsel %vm972_vm5, %v1578_v54, %v1580_v32  ;;  %v2329_v24 = vld [vmem:[%s2492_s28 + $0x20] sm:$0xff] }
 0x189   : > { %v1612_v43 = vadd.f32 %v1579_v58, %v1488_v17  ;;  %v1704_v18 = vrot.slane %v1641_v56, 2 }
 0x18a   : > { %v1613_v45 = vadd.f32 %v1581_v59, %v1489_v5  ;;  %v1703_v7 = vsel %vm1097_vm6, %v1701_v6, %v1702_v57  ;;  %v2330_v6 = vld [vmem:[%s2492_s28 + $0x38] sm:$0xff] }
 0x18b   : > { %v1705_v47 = vsel %vm1097_vm6, %v1702_v57, %v1704_v18  ;;  %v1736_v39 = vadd.f32 %v1703_v7, %v1612_v43  ;;  %v2331_v57 = vld [vmem:[%s2492_s28 + $0x28] sm:$0xff] }
 0x18c   : > { %v1737_v0 = vadd.f32 %v1705_v47, %v1613_v45 }
 0x18d   : > { %v1759_v15 = vadd.f32 %v2323_v19, %v1736_v39 }
 0x18e   : > { %v1760_v63 = vadd.f32 %v2323_v19, %v1737_v0 }
 0x18f   : > { %v1775_v34 = vmax.f32 %v1759_v15, 0.0 }
 0x190   : > { %v1776_v35 = vmax.f32 %v1760_v63, 0.0 }
 0x191   : > { %v1791_v40 = vmin.f32 %v1775_v34, 6.0  ;;  %v2332_v34 = vld [vmem:[%s2492_s28 + $0x50] sm:$0xff] }
 0x192   : > { %v1792_v1 = vmin.f32 %v1776_v35, 6.0 }
 0x194   : > { %v1806_v3 = vpack.c.bf16 %v1792_v1, %v1791_v40 }
 0x196   : > { %2277 = vmatmul.mubr.msk.bf16.gmra.mxu1 %vm828_vm4, %v1806_v3 }
 0x1ec   : > { %v2266_v38 = vpop.f32.mrf.mxu1 }
 0x1ed   : > { %v1881_v10 = vadd.f32 %v2266_v38, %v3273_v8  ;;  %v2333_v38 = vld [vmem:[%s2492_s28 + $0x40] sm:$0xff] }
 0x1ee   : > { %v1872_v26 = vpop.f32.mrf.mxu1 }
 0x1ef   : > { %v1937_v11 = vmax.f32 %v1881_v10, 0.0  ;;  %v1873_v13 = vadd.f32 %v3273_v8, %v1872_v26 }
 0x1f0   : > { %v2267_v20 = vpop.f32.mrf.mxu1 }
 0x1f1   : > { %v1953_v60 = vmin.f32 %v1937_v11, 6.0  ;;  %v1935_v50 = vmax.f32 %v1873_v13, 0.0  ;;  %v1884_v41 = vadd.f32 %v2267_v20, %v3273_v8  ;;  %v2334_v13 = vld [vmem:[%s2492_s28 + $0x58] sm:$0xff] }
 0x1f2   : > { %v1875_v22 = vpop.f32.mrf.mxu1 }
 0x1f3   : > { %v1969_v21 = vadd.f32 %v2324_v23, %v1953_v60  ;;  %v1951_v9 = vmin.f32 %v1935_v50, 6.0  ;;  %v1938_v51 = vmax.f32 %v1884_v41, 0.0  ;;  %v1876_v48 = vadd.f32 %v3273_v8, %v1875_v22  ;;  %v2335_v50 = vld [vmem:[%s2492_s28 + $0x48] sm:$0xff] }
 0x1f5   : > { %1985 = vst.msk [vmem:[%s3283_s17 + $0x10] sm:$0xff] %vm541_vm2, %v1969_v21  ;;  %v1967_v27 = vadd.f32 %v2325_v55, %v1951_v9  ;;  %v1954_v31 = vmin.f32 %v1938_v51, 6.0  ;;  %v1936_v4 = vmax.f32 %v1876_v48, 0.0 }
 0x1f7   : > { %1983 = vst.msk [vmem:[%s3283_s17] sm:$0xff] %vm541_vm2, %v1967_v27  ;;  %v1970_v62 = vadd.f32 %v2326_v33, %v1954_v31  ;;  %v1952_v29 = vmin.f32 %v1936_v4, 6.0  ;;  %v2336_v33 = vld [vmem:[%s2492_s28 + $0x70] sm:$0xff] }
 0x1f9   : > { %1986 = vst.msk [vmem:[%s3283_s17 + $0x18] sm:$0xff] %vm541_vm2, %v1970_v62  ;;  %v1968_v14 = vadd.f32 %v2327_v36, %v1952_v29 }
 0x1fb   : > { %1984 = vst.msk [vmem:[%s3283_s17 + $0x8] sm:$0xff] %vm541_vm2, %v1968_v14 }
 0x209   : > { %v2270_v25 = vpop.f32.mrf.mxu1 }
 0x20a   : > { %v1897_v12 = vadd.f32 %v2270_v25, %v3273_v8  ;;  %v2337_v25 = vld [vmem:[%s2492_s28 + $0x60] sm:$0xff] }
 0x20b   : > { %v1888_v53 = vpop.f32.mrf.mxu1 }
 0x20c   : > { %v1941_v16 = vmax.f32 %v1897_v12, 0.0  ;;  %v1889_v28 = vadd.f32 %v3273_v8, %v1888_v53 }
 0x20d   : > { %v2271_v37 = vpop.f32.mrf.mxu1 }
 0x20e   : > { %v1957_v30 = vmin.f32 %v1941_v16, 6.0  ;;  %v1939_v46 = vmax.f32 %v1889_v28, 0.0  ;;  %v1900_v61 = vadd.f32 %v2271_v37, %v3273_v8  ;;  %v2338_v28 = vld [vmem:[%s2492_s28 + $0x78] sm:$0xff] }
 0x20f   : > { %v1891_v44 = vpop.f32.mrf.mxu1 }
 0x210   : > { %v1973_v52 = vadd.f32 %v2328_v2, %v1957_v30  ;;  %v1955_v42 = vmin.f32 %v1939_v46, 6.0  ;;  %v1942_v49 = vmax.f32 %v1900_v61, 0.0  ;;  %v1892_v54 = vadd.f32 %v3273_v8, %v1891_v44  ;;  %v2339_v46 = vld [vmem:[%s2492_s28 + $0x68] sm:$0xff] }
 0x212   : > { %1989 = vst.msk [vmem:[%s3283_s17 + $0x30] sm:$0xff] %vm541_vm2, %v1973_v52  ;;  %v1971_v17 = vadd.f32 %v2329_v24, %v1955_v42  ;;  %v1958_v32 = vmin.f32 %v1942_v49, 6.0  ;;  %v1940_v56 = vmax.f32 %v1892_v54, 0.0 }
 0x214   : > { %1987 = vst.msk [vmem:[%s3283_s17 + $0x20] sm:$0xff] %vm541_vm2, %v1971_v17  ;;  %v1974_v5 = vadd.f32 %v2330_v6, %v1958_v32  ;;  %v1956_v58 = vmin.f32 %v1940_v56, 6.0 }
 0x216   : > { %1990 = vst.msk [vmem:[%s3283_s17 + $0x38] sm:$0xff] %vm541_vm2, %v1974_v5  ;;  %v1972_v59 = vadd.f32 %v2331_v57, %v1956_v58 }
 0x218   : > { %1988 = vst.msk [vmem:[%s3283_s17 + $0x28] sm:$0xff] %vm541_vm2, %v1972_v59 }
 0x230   : > { %v2274_v43 = vpop.f32.mrf.mxu1 }
 0x231   : > { %v1913_v18 = vadd.f32 %v2274_v43, %v3273_v8 }
 0x232   : > { %v1904_v45 = vpop.f32.mrf.mxu1 }
 0x233   : > { %v1945_v7 = vmax.f32 %v1913_v18, 0.0  ;;  %v1905_v47 = vadd.f32 %v3273_v8, %v1904_v45 }
 0x234   : > { %v2275_v39 = vpop.f32.mrf.mxu1 }
 0x235   : > { %v1961_v0 = vmin.f32 %v1945_v7, 6.0  ;;  %v1943_v19 = vmax.f32 %v1905_v47, 0.0  ;;  %v1916_v15 = vadd.f32 %v2275_v39, %v3273_v8 }
 0x236   : > { %v1907_v63 = vpop.f32.mrf.mxu1 }
 0x237   : > { %v1977_v35 = vadd.f32 %v2332_v34, %v1961_v0  ;;  %v1959_v40 = vmin.f32 %v1943_v19, 6.0  ;;  %v1946_v1 = vmax.f32 %v1916_v15, 0.0  ;;  %v1908_v3 = vadd.f32 %v3273_v8, %v1907_v63 }
 0x239   : > { %1993 = vst.msk [vmem:[%s3283_s17 + $0x50] sm:$0xff] %vm541_vm2, %v1977_v35  ;;  %v1975_v10 = vadd.f32 %v2333_v38, %v1959_v40  ;;  %v1962_v26 = vmin.f32 %v1946_v1, 6.0  ;;  %v1944_v11 = vmax.f32 %v1908_v3, 0.0 }
 0x23b   : > { %1991 = vst.msk [vmem:[%s3283_s17 + $0x40] sm:$0xff] %vm541_vm2, %v1975_v10  ;;  %v1978_v20 = vadd.f32 %v2334_v13, %v1962_v26  ;;  %v1960_v60 = vmin.f32 %v1944_v11, 6.0 }
 0x23d   : > { %1994 = vst.msk [vmem:[%s3283_s17 + $0x58] sm:$0xff] %vm541_vm2, %v1978_v20  ;;  %v1976_v41 = vadd.f32 %v2335_v50, %v1960_v60 }
 0x23f   : > { %1992 = vst.msk [vmem:[%s3283_s17 + $0x48] sm:$0xff] %vm541_vm2, %v1976_v41 }
 0x256   : > { %v2278_v22 = vpop.f32.mrf.mxu1 }
 0x257   : > { %v1929_v23 = vadd.f32 %v2278_v22, %v3273_v8 }
 0x258   : > { %v1920_v21 = vpop.f32.mrf.mxu1 }
 0x259   : > { %v1949_v9 = vmax.f32 %v1929_v23, 0.0  ;;  %v1921_v51 = vadd.f32 %v3273_v8, %v1920_v21 }
 0x25a   : > { %v2279_v48 = vpop.f32.mrf.mxu1 }
 0x25b   : > { %v1965_v55 = vmin.f32 %v1949_v9, 6.0  ;;  %v1947_v27 = vmax.f32 %v1921_v51, 0.0  ;;  %v1932_v31 = vadd.f32 %v2279_v48, %v3273_v8 }
 0x25c   : > { %v1923_v4 = vpop.f32.mrf.mxu1 }
 0x25d   : > { %v1981_v62 = vadd.f32 %v2336_v33, %v1965_v55  ;;  %v1963_v29 = vmin.f32 %v1947_v27, 6.0  ;;  %v1950_v36 = vmax.f32 %v1932_v31, 0.0  ;;  %v1924_v14 = vadd.f32 %v3273_v8, %v1923_v4 }
 0x25f   : > { %1997 = vst.msk [vmem:[%s3283_s17 + $0x70] sm:$0xff] %vm541_vm2, %v1981_v62  ;;  %v1979_v12 = vadd.f32 %v2337_v25, %v1963_v29  ;;  %v1966_v53 = vmin.f32 %v1950_v36, 6.0  ;;  %v1948_v16 = vmax.f32 %v1924_v14, 0.0 }
 0x261   : > { %1995 = vst.msk [vmem:[%s3283_s17 + $0x60] sm:$0xff] %vm541_vm2, %v1979_v12  ;;  %v1982_v37 = vadd.f32 %v2338_v28, %v1966_v53  ;;  %v1964_v30 = vmin.f32 %v1948_v16, 6.0 }
 0x263   : > { %1998 = vst.msk [vmem:[%s3283_s17 + $0x78] sm:$0xff] %vm541_vm2, %v1982_v37  ;;  %v1980_v61 = vadd.f32 %v2339_v46, %v1964_v30 }
 0x265   : > { %1996 = vst.msk [vmem:[%s3283_s17 + $0x68] sm:$0xff] %vm541_vm2, %v1980_v61 }
 0x266 PF: > { %s19_s13 = sadd.s32 1, %s2378_s13   ;;  %s3372_s30 = smov %s2370_s11 }
 0x267   : > { %p16_p12 = scmp.ge.s32.totalorder %s19_s13, 6   ;;  %s3373_s10 = smov %s2374_s12 }
 0x268   : > { %s3374_s11 = smov %s3377_s14  ;;  %s3375_s12 = smov %s3381_s15 }
 0x269   :  { %18 = sbr.rel (!%p16_p12) target bundleno = 3 (0x3), region = 94 }

</bundles_post_ra>
